<compile_context>
chip_gen: v6e
topology: v6e:2x2x1
jax: 0.10.0
libtpu: 0.0.40
codegen_flags: <defaults>
</compile_context>

<pallas_src>
import math

import jax
import jax.numpy as jnp
from jax.experimental import pallas as pl
from jax.experimental.pallas import tpu as pltpu

# ---- model hyper-parameters (small, consistent with the PyTorch module) ----
B = 8             # batch size
IN_OUT_DIM = 16   # D (must be even)
MID_DIM = 32      # hidden width of the coupling MLPs
HIDDEN = 2        # number of extra Linear+ReLU blocks in each coupling MLP
COUPLING = 4      # number of (additive) coupling layers, mask_config = ind % 2
DH = IN_OUT_DIM // 2
EPS = 1e-5
HALF_LOG_2PI = 0.5 * math.log(2.0 * math.pi)

MXU_DTYPE = jnp.bfloat16   # matmul operand dtype (accumulation stays float32)


# --------------------------------------------------------------------------
# Kernel
# --------------------------------------------------------------------------
def nice_forward_kernel(x_ref,
                        w_in_ref, b_in_ref,
                        w_hid_ref, b_hid_ref,
                        w_out_ref, b_out_ref,
                        s2_ref,
                        out_ref):
    """Coupling stack + scaling/prior epilogue for one batch tile.

    Layout after the in-kernel flip: features / hidden units on sublanes,
    batch on lanes.
      x_ref     : (TB, D)          f32   input features (natural orientation)
      w_in_ref  : (C, MID, D)      bf16  zero-padded -> reads only "kept" half
      b_in_ref  : (C, MID, 1)      f32
      w_hid_ref : (C, H, MID, MID) bf16
      b_hid_ref : (C, H, MID, 1)   f32
      w_out_ref : (C, D, MID)      bf16  zero-padded -> writes only the
      b_out_ref : (C, D, 1)        f32   "transformed" half
      s2_ref    : (D, 1)           f32   -0.5*(exp(scale)+eps)^2 (precomputed)
      out_ref   : (1, TB)          f32   per-row LL minus constants (lane-dense)
    """
    x = x_ref[...]                                      # (TB, D) f32

    # Orientation flip (TB, D) -> (D, TB), once per grid step.  Done as an
    # f32 identity matmul with the rhs contracted on its LAST axis, so no
    # separate transpose op and no wrapper-side HBM transpose pass is needed.
    # Every output element is 1.0 * x + exact zeros -> numerically exact.
    d = x.shape[1]
    rows = jax.lax.broadcasted_iota(jnp.int32, (d, d), 0)
    cols = jax.lax.broadcasted_iota(jnp.int32, (d, d), 1)
    eye = (rows == cols).astype(jnp.float32)
    xt = jax.lax.dot_general(eye, x, (((1,), (1,)), ((), ())),
                             preferred_element_type=jnp.float32)   # (D, TB)

    # Additive coupling stack: t = MLP(kept half); x[transformed half] += t.
    # The even/odd masking lives entirely in the zero pattern of
    # w_in / w_out / b_out, so no in-kernel gather/scatter is needed.
    for c in range(COUPLING):
        h = jnp.dot(w_in_ref[c], xt.astype(MXU_DTYPE),
                    preferred_element_type=jnp.float32) + b_in_ref[c]
        h = jnp.maximum(h, 0.0)
        for l in range(HIDDEN):
            h = jnp.dot(w_hid_ref[c, l], h.astype(MXU_DTYPE),
                        preferred_element_type=jnp.float32) + b_hid_ref[c, l]
            h = jnp.maximum(h, 0.0)
        t = jnp.dot(w_out_ref[c], h.astype(MXU_DTYPE),
                    preferred_element_type=jnp.float32) + b_out_ref[c]
        xt = xt + t

    # Scaling layer + gaussian prior, input-dependent part only:
    #   sum_d ( -0.5 * (xt_d * (exp(scale_d)+eps))^2 )  ==  sum_d xt_d^2 * s2_d
    # The constants sum(scale) - D - D*0.5*log(2*pi) are added in the wrapper.
    out_ref[...] = jnp.sum(xt * xt * s2_ref[...], axis=0, keepdims=True)


# --------------------------------------------------------------------------
# Wrapper
# --------------------------------------------------------------------------
def _round_up(n, m):
    return ((n + m - 1) // m) * m


def _round_down(n, m):
    return (n // m) * m


def _choose_batch_tile(batch):
    """Batch tile / padded batch selection.

    - padded batch <= 256: single grid step (largest possible matmul N axis;
      splitting 256 rows across two v7x cores isn't worth halving N on v6e).
    - larger: >= 2 grid steps so the `parallel` batch axis can shard across
      v7x's two TensorCores, TB in [128, 512] (512 cap = v5e vst/vreg ceiling).
    """
    bp = _round_up(batch, 128)
    if bp <= 256:
        return bp, bp
    tb = min(512, max(128, _round_down(bp // 2, 128)))
    # TODO(synk): sweep TB in {256, 512, 1024} per generation for large batches.
    bp = _round_up(batch, tb)
    return tb, bp


def _pack_params_for_kernel(params):
    """Fold the even/odd coupling masks into zero-padded weight matrices, move
    everything to the feature-on-sublane / batch-on-lane orientation the kernel
    uses, and precompute the input-independent scaling term s2.  MXU operands
    (weight matrices) are pre-cast to bf16 once; biases / s2 stay f32."""
    w_in, w_out, b_out = params["w_in"], params["w_out"], params["b_out"]
    w_in_p = jnp.zeros((COUPLING, IN_OUT_DIM, MID_DIM), jnp.float32)
    w_out_p = jnp.zeros((COUPLING, MID_DIM, IN_OUT_DIM), jnp.float32)
    b_out_p = jnp.zeros((COUPLING, 1, IN_OUT_DIM), jnp.float32)
    for c in range(COUPLING):
        # mask_config = c % 2: 0 -> read even half / write odd half; 1 -> swap.
        rd, wr = (0, 1) if c % 2 == 0 else (1, 0)
        w_in_p = w_in_p.at[c, rd::2, :].set(w_in[c])
        w_out_p = w_out_p.at[c, :, wr::2].set(w_out[c])
        b_out_p = b_out_p.at[c, :, wr::2].set(b_out[c])

    scale_t = jnp.swapaxes(params["scale"], -1, -2)                  # (D, 1)
    s2 = -0.5 * (jnp.exp(scale_t) + EPS) ** 2                        # (D, 1)

    return dict(
        w_in=jnp.swapaxes(w_in_p, -1, -2).astype(MXU_DTYPE),         # (C,MID,D)
        b_in=jnp.swapaxes(params["b_in"], -1, -2),                   # (C,MID,1)
        w_hid=jnp.swapaxes(params["w_hid"], -1, -2).astype(MXU_DTYPE),
        b_hid=jnp.swapaxes(params["b_hid"], -1, -2),                 # (C,H,MID,1)
        w_out=jnp.swapaxes(w_out_p, -1, -2).astype(MXU_DTYPE),       # (C,D,MID)
        b_out=jnp.swapaxes(b_out_p, -1, -2),                         # (C,D,1)
        s2=s2,                                                       # (D,1)
    )


@jax.jit
def nice_log_prob(x, params):
    batch, dim = x.shape
    kp = _pack_params_for_kernel(params)

    tb, bp = _choose_batch_tile(batch)
    xp = x if bp == batch else jnp.pad(x, ((0, bp - batch), (0, 0)))

    def resident_spec(a):
        # whole-array block with a constant index_map -> stays VMEM-resident.
        return pl.BlockSpec(a.shape, lambda i, _n=a.ndim: (0,) * _n)

    out = pl.pallas_call(
        nice_forward_kernel,
        out_shape=jax.ShapeDtypeStruct((1, bp), jnp.float32),
        grid=(bp // tb,),
        in_specs=[
            pl.BlockSpec((tb, dim), lambda i: (i, 0)),     # activations (Bp,D)
            resident_spec(kp["w_in"]), resident_spec(kp["b_in"]),
            resident_spec(kp["w_hid"]), resident_spec(kp["b_hid"]),
            resident_spec(kp["w_out"]), resident_spec(kp["b_out"]),
            resident_spec(kp["s2"]),
        ],
        out_specs=pl.BlockSpec((1, tb), lambda i: (0, i)),  # lane-dense LL
        compiler_params=pltpu.CompilerParams(
            dimension_semantics=("parallel",)),             # megacore on v7x
    )(xp, kp["w_in"], kp["b_in"], kp["w_hid"], kp["b_hid"],
      kp["w_out"], kp["b_out"], kp["s2"])

    # Input-independent constants hoisted out of the kernel:
    #   scaling log|det J| = sum(scale);  NICE.log_prob subtracts D;
    #   gaussian prior constant = -D * 0.5*log(2*pi).
    const = (jnp.sum(params["scale"]) - float(IN_OUT_DIM)
             - float(IN_OUT_DIM) * HALF_LOG_2PI)
    return out[0, :batch] + const


# --------------------------------------------------------------------------
# Pure-JAX reference (mirrors the PyTorch module semantics)
# --------------------------------------------------------------------------
def nice_log_prob_ref(x, params, mxu_dtype=jnp.float32):
    """Reference.  With mxu_dtype=bf16 it matches the kernel's MXU operand
    precision; with f32 it is the exact PyTorch-module semantics."""
    def mm(a, w):
        return jnp.dot(a.astype(mxu_dtype), w.astype(mxu_dtype),
                       preferred_element_type=jnp.float32)

    xe = x[:, 0::2]
    xo = x[:, 1::2]
    for c in range(COUPLING):
        mask_config = c % 2
        src = xe if mask_config == 0 else xo
        h = jnp.maximum(mm(src, params["w_in"][c]) + params["b_in"][c], 0.0)
        for l in range(HIDDEN):
            h = jnp.maximum(mm(h, params["w_hid"][c, l]) + params["b_hid"][c, l], 0.0)
        t = mm(h, params["w_out"][c]) + params["b_out"][c]
        if mask_config == 0:
            xo = xo + t
        else:
            xe = xe + t
    scale = params["scale"]
    se = scale[:, 0::2]
    so = scale[:, 1::2]
    ze = xe * (jnp.exp(se) + EPS)
    zo = xo * (jnp.exp(so) + EPS)
    log_det = jnp.sum(scale) - float(IN_OUT_DIM)
    ll = (jnp.sum(-0.5 * ze * ze - HALF_LOG_2PI, axis=1)
          + jnp.sum(-0.5 * zo * zo - HALF_LOG_2PI, axis=1))
    return ll + log_det


# --------------------------------------------------------------------------
# Parameter init (kaiming-uniform-like matrices, tiny biases)
# --------------------------------------------------------------------------
def init_params(key):
    ks = jax.random.split(key, 8)

    def kaiming_uniform(k, shape, fan_in):
        bound = math.sqrt(6.0 / fan_in)
        return jax.random.uniform(k, shape, jnp.float32, -bound, bound)

    params = {
        # stacked over coupling layers; biases kept 2D ((1, N)) for TPU layout
        "w_in":  kaiming_uniform(ks[0], (COUPLING, DH, MID_DIM), DH),
        "b_in":  0.001 * jax.random.normal(ks[1], (COUPLING, 1, MID_DIM), jnp.float32),
        "w_hid": kaiming_uniform(ks[2], (COUPLING, HIDDEN, MID_DIM, MID_DIM), MID_DIM),
        "b_hid": 0.001 * jax.random.normal(ks[3], (COUPLING, HIDDEN, 1, MID_DIM), jnp.float32),
        "w_out": kaiming_uniform(ks[4], (COUPLING, MID_DIM, DH), MID_DIM),
        "b_out": 0.001 * jax.random.normal(ks[5], (COUPLING, 1, DH), jnp.float32),
        # Scaling parameter (module inits to zeros; small values keep it nontrivial)
        "scale": 0.01 * jax.random.normal(ks[6], (1, IN_OUT_DIM), jnp.float32),
    }
    return params


if __name__ == "__main__":
    key = jax.random.PRNGKey(0)
    k_param, k_x = jax.random.split(key)
    params = init_params(k_param)
    x = jax.random.normal(k_x, (B, IN_OUT_DIM), jnp.float32)

    out = jax.block_until_ready(nice_log_prob(x, params))
    assert out.shape == (B,)

    # Structural check: precision-matched reference (same bf16 MXU operands,
    # f32 accumulate) -> validates padded-weight trick, in-kernel flip, grid,
    # layout and the hoisted epilogue constants.
    ref_matched = nice_log_prob_ref(x, params, mxu_dtype=MXU_DTYPE)
    assert jnp.allclose(out, ref_matched, rtol=5e-3, atol=1e-1), (out, ref_matched)

    # Semantic check vs the full-f32 reference (looser tolerance because the
    # kernel feeds bf16 operands to the MXU for the coupling MLP matmuls).
    ref_f32 = nice_log_prob_ref(x, params, mxu_dtype=jnp.float32)
    assert jnp.allclose(out, ref_f32, rtol=5e-2, atol=5e-1), (out, ref_f32)

    print("KERNEL_OK")
</pallas_src>

<mosaic_0001>
module attributes {stable_mosaic.version = 11 : i64} {
  func.func @nice_forward_kernel(%arg0: i32, %arg1: memref<128x16xf32, #tpu.memory_space<vmem>>, %arg2: memref<4x32x16xbf16, #tpu.memory_space<vmem>>, %arg3: memref<4x32x1xf32, #tpu.memory_space<vmem>>, %arg4: memref<4x2x32x32xbf16, #tpu.memory_space<vmem>>, %arg5: memref<4x2x32x1xf32, #tpu.memory_space<vmem>>, %arg6: memref<4x16x32xbf16, #tpu.memory_space<vmem>>, %arg7: memref<4x16x1xf32, #tpu.memory_space<vmem>>, %arg8: memref<16x1xf32, #tpu.memory_space<vmem>>, %arg9: memref<1x128xf32, #tpu.memory_space<vmem>>) attributes {dimension_semantics = [#tpu.dimension_semantics<parallel>], iteration_bounds = array<i64: 1>, scalar_prefetch = 0 : i64, scratch_operands = 0 : i64, tpu.core_type = #tpu.core_type<tc>, window_params = [{transform_indices = @transform_0, window_bounds = array<i64: 128, 16>}, {pipeline_mode = #tpu.pipeline_mode<synchronous>, transform_indices = @transform_1, window_bounds = array<i64: 4, 32, 16>}, {pipeline_mode = #tpu.pipeline_mode<synchronous>, transform_indices = @transform_2, window_bounds = array<i64: 4, 32, 1>}, {pipeline_mode = #tpu.pipeline_mode<synchronous>, transform_indices = @transform_3, window_bounds = array<i64: 4, 2, 32, 32>}, {pipeline_mode = #tpu.pipeline_mode<synchronous>, transform_indices = @transform_4, window_bounds = array<i64: 4, 2, 32, 1>}, {pipeline_mode = #tpu.pipeline_mode<synchronous>, transform_indices = @transform_5, window_bounds = array<i64: 4, 16, 32>}, {pipeline_mode = #tpu.pipeline_mode<synchronous>, transform_indices = @transform_6, window_bounds = array<i64: 4, 16, 1>}, {pipeline_mode = #tpu.pipeline_mode<synchronous>, transform_indices = @transform_7, window_bounds = array<i64: 16, 1>}, {transform_indices = @transform_8, window_bounds = array<i64: 1, 128>}]} {
    %c0 = arith.constant 0 : index
    %c0_0 = arith.constant 0 : index
    %0 = vector.load %arg1[%c0, %c0_0] : memref<128x16xf32, #tpu.memory_space<vmem>>, vector<128x16xf32>
    %1 = tpu.iota {dimensions = array<i32: 0>} : vector<16x16xi32>
    %2 = tpu.iota {dimensions = array<i32: 1>} : vector<16x16xi32>
    %3 = arith.cmpi eq, %1, %2 : vector<16x16xi32>
    %4 = arith.extui %3 : vector<16x16xi1> to vector<16x16xi32>
    %5 = arith.sitofp %4 : vector<16x16xi32> to vector<16x16xf32>
    %cst = arith.constant dense<0.000000e+00> : vector<16x128xf32>
    %6 = tpu.matmul %5, %0, %cst {dimension_numbers = #tpu.dot_dimension_numbers<[1], [1], [0], [0], [0, 0, 1, 0], [], []>} : vector<16x16xf32>, vector<128x16xf32>, vector<16x128xf32> -> vector<16x128xf32>
    %c0_1 = arith.constant 0 : index
    %c0_2 = arith.constant 0 : index
    %c0_3 = arith.constant 0 : index
    %7 = vector.load %arg2[%c0_1, %c0_2, %c0_3] : memref<4x32x16xbf16, #tpu.memory_space<vmem>>, vector<1x32x16xbf16>
    %8 = vector.shape_cast %7 : vector<1x32x16xbf16> to vector<32x16xbf16>
    %9 = arith.truncf %6 : vector<16x128xf32> to vector<16x128xbf16>
    %cst_4 = arith.constant dense<0.000000e+00> : vector<32x128xf32>
    %10 = tpu.matmul %8, %9, %cst_4 {dimension_numbers = #tpu.dot_dimension_numbers<[1], [0], [0], [1], [0, 0, 1, 1], [], []>} : vector<32x16xbf16>, vector<16x128xbf16>, vector<32x128xf32> -> vector<32x128xf32>
    %c0_5 = arith.constant 0 : index
    %c0_6 = arith.constant 0 : index
    %c0_7 = arith.constant 0 : index
    %11 = vector.load %arg3[%c0_5, %c0_6, %c0_7] : memref<4x32x1xf32, #tpu.memory_space<vmem>>, vector<1x32x1xf32>
    %12 = vector.shape_cast %11 : vector<1x32x1xf32> to vector<32x1xf32>
    %13 = vector.broadcast %12 : vector<32x1xf32> to vector<32x128xf32>
    %14 = arith.addf %10, %13 : vector<32x128xf32>
    %cst_8 = arith.constant 0.000000e+00 : f32
    %15 = vector.broadcast %cst_8 : f32 to vector<32x128xf32>
    %16 = arith.maximumf %14, %15 : vector<32x128xf32>
    %c0_9 = arith.constant 0 : index
    %c0_10 = arith.constant 0 : index
    %c0_11 = arith.constant 0 : index
    %c0_12 = arith.constant 0 : index
    %17 = vector.load %arg4[%c0_9, %c0_10, %c0_11, %c0_12] : memref<4x2x32x32xbf16, #tpu.memory_space<vmem>>, vector<1x1x32x32xbf16>
    %18 = vector.shape_cast %17 : vector<1x1x32x32xbf16> to vector<32x32xbf16>
    %19 = arith.truncf %16 : vector<32x128xf32> to vector<32x128xbf16>
    %cst_13 = arith.constant dense<0.000000e+00> : vector<32x128xf32>
    %20 = tpu.matmul %18, %19, %cst_13 {dimension_numbers = #tpu.dot_dimension_numbers<[1], [0], [0], [1], [0, 0, 1, 1], [], []>} : vector<32x32xbf16>, vector<32x128xbf16>, vector<32x128xf32> -> vector<32x128xf32>
    %c0_14 = arith.constant 0 : index
    %c0_15 = arith.constant 0 : index
    %c0_16 = arith.constant 0 : index
    %c0_17 = arith.constant 0 : index
    %21 = vector.load %arg5[%c0_14, %c0_15, %c0_16, %c0_17] : memref<4x2x32x1xf32, #tpu.memory_space<vmem>>, vector<1x1x32x1xf32>
    %22 = vector.shape_cast %21 : vector<1x1x32x1xf32> to vector<32x1xf32>
    %23 = vector.broadcast %22 : vector<32x1xf32> to vector<32x128xf32>
    %24 = arith.addf %20, %23 : vector<32x128xf32>
    %cst_18 = arith.constant 0.000000e+00 : f32
    %25 = vector.broadcast %cst_18 : f32 to vector<32x128xf32>
    %26 = arith.maximumf %24, %25 : vector<32x128xf32>
    %c0_19 = arith.constant 0 : index
    %c1 = arith.constant 1 : index
    %c0_20 = arith.constant 0 : index
    %c0_21 = arith.constant 0 : index
    %27 = vector.load %arg4[%c0_19, %c1, %c0_20, %c0_21] : memref<4x2x32x32xbf16, #tpu.memory_space<vmem>>, vector<1x1x32x32xbf16>
    %28 = vector.shape_cast %27 : vector<1x1x32x32xbf16> to vector<32x32xbf16>
    %29 = arith.truncf %26 : vector<32x128xf32> to vector<32x128xbf16>
    %cst_22 = arith.constant dense<0.000000e+00> : vector<32x128xf32>
    %30 = tpu.matmul %28, %29, %cst_22 {dimension_numbers = #tpu.dot_dimension_numbers<[1], [0], [0], [1], [0, 0, 1, 1], [], []>} : vector<32x32xbf16>, vector<32x128xbf16>, vector<32x128xf32> -> vector<32x128xf32>
    %c0_23 = arith.constant 0 : index
    %c1_24 = arith.constant 1 : index
    %c0_25 = arith.constant 0 : index
    %c0_26 = arith.constant 0 : index
    %31 = vector.load %arg5[%c0_23, %c1_24, %c0_25, %c0_26] : memref<4x2x32x1xf32, #tpu.memory_space<vmem>>, vector<1x1x32x1xf32>
    %32 = vector.shape_cast %31 : vector<1x1x32x1xf32> to vector<32x1xf32>
    %33 = vector.broadcast %32 : vector<32x1xf32> to vector<32x128xf32>
    %34 = arith.addf %30, %33 : vector<32x128xf32>
    %cst_27 = arith.constant 0.000000e+00 : f32
    %35 = vector.broadcast %cst_27 : f32 to vector<32x128xf32>
    %36 = arith.maximumf %34, %35 : vector<32x128xf32>
    %c0_28 = arith.constant 0 : index
    %c0_29 = arith.constant 0 : index
    %c0_30 = arith.constant 0 : index
    %37 = vector.load %arg6[%c0_28, %c0_29, %c0_30] : memref<4x16x32xbf16, #tpu.memory_space<vmem>>, vector<1x16x32xbf16>
    %38 = vector.shape_cast %37 : vector<1x16x32xbf16> to vector<16x32xbf16>
    %39 = arith.truncf %36 : vector<32x128xf32> to vector<32x128xbf16>
    %cst_31 = arith.constant dense<0.000000e+00> : vector<16x128xf32>
    %40 = tpu.matmul %38, %39, %cst_31 {dimension_numbers = #tpu.dot_dimension_numbers<[1], [0], [0], [1], [0, 0, 1, 1], [], []>} : vector<16x32xbf16>, vector<32x128xbf16>, vector<16x128xf32> -> vector<16x128xf32>
    %c0_32 = arith.constant 0 : index
    %c0_33 = arith.constant 0 : index
    %c0_34 = arith.constant 0 : index
    %41 = vector.load %arg7[%c0_32, %c0_33, %c0_34] : memref<4x16x1xf32, #tpu.memory_space<vmem>>, vector<1x16x1xf32>
    %42 = vector.shape_cast %41 : vector<1x16x1xf32> to vector<16x1xf32>
    %43 = vector.broadcast %42 : vector<16x1xf32> to vector<16x128xf32>
    %44 = arith.addf %40, %43 : vector<16x128xf32>
    %45 = arith.addf %6, %44 : vector<16x128xf32>
    %c1_35 = arith.constant 1 : index
    %c0_36 = arith.constant 0 : index
    %c0_37 = arith.constant 0 : index
    %46 = vector.load %arg2[%c1_35, %c0_36, %c0_37] : memref<4x32x16xbf16, #tpu.memory_space<vmem>>, vector<1x32x16xbf16>
    %47 = vector.shape_cast %46 : vector<1x32x16xbf16> to vector<32x16xbf16>
    %48 = arith.truncf %45 : vector<16x128xf32> to vector<16x128xbf16>
    %cst_38 = arith.constant dense<0.000000e+00> : vector<32x128xf32>
    %49 = tpu.matmul %47, %48, %cst_38 {dimension_numbers = #tpu.dot_dimension_numbers<[1], [0], [0], [1], [0, 0, 1, 1], [], []>} : vector<32x16xbf16>, vector<16x128xbf16>, vector<32x128xf32> -> vector<32x128xf32>
    %c1_39 = arith.constant 1 : index
    %c0_40 = arith.constant 0 : index
    %c0_41 = arith.constant 0 : index
    %50 = vector.load %arg3[%c1_39, %c0_40, %c0_41] : memref<4x32x1xf32, #tpu.memory_space<vmem>>, vector<1x32x1xf32>
    %51 = vector.shape_cast %50 : vector<1x32x1xf32> to vector<32x1xf32>
    %52 = vector.broadcast %51 : vector<32x1xf32> to vector<32x128xf32>
    %53 = arith.addf %49, %52 : vector<32x128xf32>
    %cst_42 = arith.constant 0.000000e+00 : f32
    %54 = vector.broadcast %cst_42 : f32 to vector<32x128xf32>
    %55 = arith.maximumf %53, %54 : vector<32x128xf32>
    %c1_43 = arith.constant 1 : index
    %c0_44 = arith.constant 0 : index
    %c0_45 = arith.constant 0 : index
    %c0_46 = arith.constant 0 : index
    %56 = vector.load %arg4[%c1_43, %c0_44, %c0_45, %c0_46] : memref<4x2x32x32xbf16, #tpu.memory_space<vmem>>, vector<1x1x32x32xbf16>
    %57 = vector.shape_cast %56 : vector<1x1x32x32xbf16> to vector<32x32xbf16>
    %58 = arith.truncf %55 : vector<32x128xf32> to vector<32x128xbf16>
    %cst_47 = arith.constant dense<0.000000e+00> : vector<32x128xf32>
    %59 = tpu.matmul %57, %58, %cst_47 {dimension_numbers = #tpu.dot_dimension_numbers<[1], [0], [0], [1], [0, 0, 1, 1], [], []>} : vector<32x32xbf16>, vector<32x128xbf16>, vector<32x128xf32> -> vector<32x128xf32>
    %c1_48 = arith.constant 1 : index
    %c0_49 = arith.constant 0 : index
    %c0_50 = arith.constant 0 : index
    %c0_51 = arith.constant 0 : index
    %60 = vector.load %arg5[%c1_48, %c0_49, %c0_50, %c0_51] : memref<4x2x32x1xf32, #tpu.memory_space<vmem>>, vector<1x1x32x1xf32>
    %61 = vector.shape_cast %60 : vector<1x1x32x1xf32> to vector<32x1xf32>
    %62 = vector.broadcast %61 : vector<32x1xf32> to vector<32x128xf32>
    %63 = arith.addf %59, %62 : vector<32x128xf32>
    %cst_52 = arith.constant 0.000000e+00 : f32
    %64 = vector.broadcast %cst_52 : f32 to vector<32x128xf32>
    %65 = arith.maximumf %63, %64 : vector<32x128xf32>
    %c1_53 = arith.constant 1 : index
    %c1_54 = arith.constant 1 : index
    %c0_55 = arith.constant 0 : index
    %c0_56 = arith.constant 0 : index
    %66 = vector.load %arg4[%c1_53, %c1_54, %c0_55, %c0_56] : memref<4x2x32x32xbf16, #tpu.memory_space<vmem>>, vector<1x1x32x32xbf16>
    %67 = vector.shape_cast %66 : vector<1x1x32x32xbf16> to vector<32x32xbf16>
    %68 = arith.truncf %65 : vector<32x128xf32> to vector<32x128xbf16>
    %cst_57 = arith.constant dense<0.000000e+00> : vector<32x128xf32>
    %69 = tpu.matmul %67, %68, %cst_57 {dimension_numbers = #tpu.dot_dimension_numbers<[1], [0], [0], [1], [0, 0, 1, 1], [], []>} : vector<32x32xbf16>, vector<32x128xbf16>, vector<32x128xf32> -> vector<32x128xf32>
    %c1_58 = arith.constant 1 : index
    %c1_59 = arith.constant 1 : index
    %c0_60 = arith.constant 0 : index
    %c0_61 = arith.constant 0 : index
    %70 = vector.load %arg5[%c1_58, %c1_59, %c0_60, %c0_61] : memref<4x2x32x1xf32, #tpu.memory_space<vmem>>, vector<1x1x32x1xf32>
    %71 = vector.shape_cast %70 : vector<1x1x32x1xf32> to vector<32x1xf32>
    %72 = vector.broadcast %71 : vector<32x1xf32> to vector<32x128xf32>
    %73 = arith.addf %69, %72 : vector<32x128xf32>
    %cst_62 = arith.constant 0.000000e+00 : f32
    %74 = vector.broadcast %cst_62 : f32 to vector<32x128xf32>
    %75 = arith.maximumf %73, %74 : vector<32x128xf32>
    %c1_63 = arith.constant 1 : index
    %c0_64 = arith.constant 0 : index
    %c0_65 = arith.constant 0 : index
    %76 = vector.load %arg6[%c1_63, %c0_64, %c0_65] : memref<4x16x32xbf16, #tpu.memory_space<vmem>>, vector<1x16x32xbf16>
    %77 = vector.shape_cast %76 : vector<1x16x32xbf16> to vector<16x32xbf16>
    %78 = arith.truncf %75 : vector<32x128xf32> to vector<32x128xbf16>
    %cst_66 = arith.constant dense<0.000000e+00> : vector<16x128xf32>
    %79 = tpu.matmul %77, %78, %cst_66 {dimension_numbers = #tpu.dot_dimension_numbers<[1], [0], [0], [1], [0, 0, 1, 1], [], []>} : vector<16x32xbf16>, vector<32x128xbf16>, vector<16x128xf32> -> vector<16x128xf32>
    %c1_67 = arith.constant 1 : index
    %c0_68 = arith.constant 0 : index
    %c0_69 = arith.constant 0 : index
    %80 = vector.load %arg7[%c1_67, %c0_68, %c0_69] : memref<4x16x1xf32, #tpu.memory_space<vmem>>, vector<1x16x1xf32>
    %81 = vector.shape_cast %80 : vector<1x16x1xf32> to vector<16x1xf32>
    %82 = vector.broadcast %81 : vector<16x1xf32> to vector<16x128xf32>
    %83 = arith.addf %79, %82 : vector<16x128xf32>
    %84 = arith.addf %45, %83 : vector<16x128xf32>
    %c2 = arith.constant 2 : index
    %c0_70 = arith.constant 0 : index
    %c0_71 = arith.constant 0 : index
    %85 = vector.load %arg2[%c2, %c0_70, %c0_71] : memref<4x32x16xbf16, #tpu.memory_space<vmem>>, vector<1x32x16xbf16>
    %86 = vector.shape_cast %85 : vector<1x32x16xbf16> to vector<32x16xbf16>
    %87 = arith.truncf %84 : vector<16x128xf32> to vector<16x128xbf16>
    %cst_72 = arith.constant dense<0.000000e+00> : vector<32x128xf32>
    %88 = tpu.matmul %86, %87, %cst_72 {dimension_numbers = #tpu.dot_dimension_numbers<[1], [0], [0], [1], [0, 0, 1, 1], [], []>} : vector<32x16xbf16>, vector<16x128xbf16>, vector<32x128xf32> -> vector<32x128xf32>
    %c2_73 = arith.constant 2 : index
    %c0_74 = arith.constant 0 : index
    %c0_75 = arith.constant 0 : index
    %89 = vector.load %arg3[%c2_73, %c0_74, %c0_75] : memref<4x32x1xf32, #tpu.memory_space<vmem>>, vector<1x32x1xf32>
    %90 = vector.shape_cast %89 : vector<1x32x1xf32> to vector<32x1xf32>
    %91 = vector.broadcast %90 : vector<32x1xf32> to vector<32x128xf32>
    %92 = arith.addf %88, %91 : vector<32x128xf32>
    %cst_76 = arith.constant 0.000000e+00 : f32
    %93 = vector.broadcast %cst_76 : f32 to vector<32x128xf32>
    %94 = arith.maximumf %92, %93 : vector<32x128xf32>
    %c2_77 = arith.constant 2 : index
    %c0_78 = arith.constant 0 : index
    %c0_79 = arith.constant 0 : index
    %c0_80 = arith.constant 0 : index
    %95 = vector.load %arg4[%c2_77, %c0_78, %c0_79, %c0_80] : memref<4x2x32x32xbf16, #tpu.memory_space<vmem>>, vector<1x1x32x32xbf16>
    %96 = vector.shape_cast %95 : vector<1x1x32x32xbf16> to vector<32x32xbf16>
    %97 = arith.truncf %94 : vector<32x128xf32> to vector<32x128xbf16>
    %cst_81 = arith.constant dense<0.000000e+00> : vector<32x128xf32>
    %98 = tpu.matmul %96, %97, %cst_81 {dimension_numbers = #tpu.dot_dimension_numbers<[1], [0], [0], [1], [0, 0, 1, 1], [], []>} : vector<32x32xbf16>, vector<32x128xbf16>, vector<32x128xf32> -> vector<32x128xf32>
    %c2_82 = arith.constant 2 : index
    %c0_83 = arith.constant 0 : index
    %c0_84 = arith.constant 0 : index
    %c0_85 = arith.constant 0 : index
    %99 = vector.load %arg5[%c2_82, %c0_83, %c0_84, %c0_85] : memref<4x2x32x1xf32, #tpu.memory_space<vmem>>, vector<1x1x32x1xf32>
    %100 = vector.shape_cast %99 : vector<1x1x32x1xf32> to vector<32x1xf32>
    %101 = vector.broadcast %100 : vector<32x1xf32> to vector<32x128xf32>
    %102 = arith.addf %98, %101 : vector<32x128xf32>
    %cst_86 = arith.constant 0.000000e+00 : f32
    %103 = vector.broadcast %cst_86 : f32 to vector<32x128xf32>
    %104 = arith.maximumf %102, %103 : vector<32x128xf32>
    %c2_87 = arith.constant 2 : index
    %c1_88 = arith.constant 1 : index
    %c0_89 = arith.constant 0 : index
    %c0_90 = arith.constant 0 : index
    %105 = vector.load %arg4[%c2_87, %c1_88, %c0_89, %c0_90] : memref<4x2x32x32xbf16, #tpu.memory_space<vmem>>, vector<1x1x32x32xbf16>
    %106 = vector.shape_cast %105 : vector<1x1x32x32xbf16> to vector<32x32xbf16>
    %107 = arith.truncf %104 : vector<32x128xf32> to vector<32x128xbf16>
    %cst_91 = arith.constant dense<0.000000e+00> : vector<32x128xf32>
    %108 = tpu.matmul %106, %107, %cst_91 {dimension_numbers = #tpu.dot_dimension_numbers<[1], [0], [0], [1], [0, 0, 1, 1], [], []>} : vector<32x32xbf16>, vector<32x128xbf16>, vector<32x128xf32> -> vector<32x128xf32>
    %c2_92 = arith.constant 2 : index
    %c1_93 = arith.constant 1 : index
    %c0_94 = arith.constant 0 : index
    %c0_95 = arith.constant 0 : index
    %109 = vector.load %arg5[%c2_92, %c1_93, %c0_94, %c0_95] : memref<4x2x32x1xf32, #tpu.memory_space<vmem>>, vector<1x1x32x1xf32>
    %110 = vector.shape_cast %109 : vector<1x1x32x1xf32> to vector<32x1xf32>
    %111 = vector.broadcast %110 : vector<32x1xf32> to vector<32x128xf32>
    %112 = arith.addf %108, %111 : vector<32x128xf32>
    %cst_96 = arith.constant 0.000000e+00 : f32
    %113 = vector.broadcast %cst_96 : f32 to vector<32x128xf32>
    %114 = arith.maximumf %112, %113 : vector<32x128xf32>
    %c2_97 = arith.constant 2 : index
    %c0_98 = arith.constant 0 : index
    %c0_99 = arith.constant 0 : index
    %115 = vector.load %arg6[%c2_97, %c0_98, %c0_99] : memref<4x16x32xbf16, #tpu.memory_space<vmem>>, vector<1x16x32xbf16>
    %116 = vector.shape_cast %115 : vector<1x16x32xbf16> to vector<16x32xbf16>
    %117 = arith.truncf %114 : vector<32x128xf32> to vector<32x128xbf16>
    %cst_100 = arith.constant dense<0.000000e+00> : vector<16x128xf32>
    %118 = tpu.matmul %116, %117, %cst_100 {dimension_numbers = #tpu.dot_dimension_numbers<[1], [0], [0], [1], [0, 0, 1, 1], [], []>} : vector<16x32xbf16>, vector<32x128xbf16>, vector<16x128xf32> -> vector<16x128xf32>
    %c2_101 = arith.constant 2 : index
    %c0_102 = arith.constant 0 : index
    %c0_103 = arith.constant 0 : index
    %119 = vector.load %arg7[%c2_101, %c0_102, %c0_103] : memref<4x16x1xf32, #tpu.memory_space<vmem>>, vector<1x16x1xf32>
    %120 = vector.shape_cast %119 : vector<1x16x1xf32> to vector<16x1xf32>
    %121 = vector.broadcast %120 : vector<16x1xf32> to vector<16x128xf32>
    %122 = arith.addf %118, %121 : vector<16x128xf32>
    %123 = arith.addf %84, %122 : vector<16x128xf32>
    %c3 = arith.constant 3 : index
    %c0_104 = arith.constant 0 : index
    %c0_105 = arith.constant 0 : index
    %124 = vector.load %arg2[%c3, %c0_104, %c0_105] : memref<4x32x16xbf16, #tpu.memory_space<vmem>>, vector<1x32x16xbf16>
    %125 = vector.shape_cast %124 : vector<1x32x16xbf16> to vector<32x16xbf16>
    %126 = arith.truncf %123 : vector<16x128xf32> to vector<16x128xbf16>
    %cst_106 = arith.constant dense<0.000000e+00> : vector<32x128xf32>
    %127 = tpu.matmul %125, %126, %cst_106 {dimension_numbers = #tpu.dot_dimension_numbers<[1], [0], [0], [1], [0, 0, 1, 1], [], []>} : vector<32x16xbf16>, vector<16x128xbf16>, vector<32x128xf32> -> vector<32x128xf32>
    %c3_107 = arith.constant 3 : index
    %c0_108 = arith.constant 0 : index
    %c0_109 = arith.constant 0 : index
    %128 = vector.load %arg3[%c3_107, %c0_108, %c0_109] : memref<4x32x1xf32, #tpu.memory_space<vmem>>, vector<1x32x1xf32>
    %129 = vector.shape_cast %128 : vector<1x32x1xf32> to vector<32x1xf32>
    %130 = vector.broadcast %129 : vector<32x1xf32> to vector<32x128xf32>
    %131 = arith.addf %127, %130 : vector<32x128xf32>
    %cst_110 = arith.constant 0.000000e+00 : f32
    %132 = vector.broadcast %cst_110 : f32 to vector<32x128xf32>
    %133 = arith.maximumf %131, %132 : vector<32x128xf32>
    %c3_111 = arith.constant 3 : index
    %c0_112 = arith.constant 0 : index
    %c0_113 = arith.constant 0 : index
    %c0_114 = arith.constant 0 : index
    %134 = vector.load %arg4[%c3_111, %c0_112, %c0_113, %c0_114] : memref<4x2x32x32xbf16, #tpu.memory_space<vmem>>, vector<1x1x32x32xbf16>
    %135 = vector.shape_cast %134 : vector<1x1x32x32xbf16> to vector<32x32xbf16>
    %136 = arith.truncf %133 : vector<32x128xf32> to vector<32x128xbf16>
    %cst_115 = arith.constant dense<0.000000e+00> : vector<32x128xf32>
    %137 = tpu.matmul %135, %136, %cst_115 {dimension_numbers = #tpu.dot_dimension_numbers<[1], [0], [0], [1], [0, 0, 1, 1], [], []>} : vector<32x32xbf16>, vector<32x128xbf16>, vector<32x128xf32> -> vector<32x128xf32>
    %c3_116 = arith.constant 3 : index
    %c0_117 = arith.constant 0 : index
    %c0_118 = arith.constant 0 : index
    %c0_119 = arith.constant 0 : index
    %138 = vector.load %arg5[%c3_116, %c0_117, %c0_118, %c0_119] : memref<4x2x32x1xf32, #tpu.memory_space<vmem>>, vector<1x1x32x1xf32>
    %139 = vector.shape_cast %138 : vector<1x1x32x1xf32> to vector<32x1xf32>
    %140 = vector.broadcast %139 : vector<32x1xf32> to vector<32x128xf32>
    %141 = arith.addf %137, %140 : vector<32x128xf32>
    %cst_120 = arith.constant 0.000000e+00 : f32
    %142 = vector.broadcast %cst_120 : f32 to vector<32x128xf32>
    %143 = arith.maximumf %141, %142 : vector<32x128xf32>
    %c3_121 = arith.constant 3 : index
    %c1_122 = arith.constant 1 : index
    %c0_123 = arith.constant 0 : index
    %c0_124 = arith.constant 0 : index
    %144 = vector.load %arg4[%c3_121, %c1_122, %c0_123, %c0_124] : memref<4x2x32x32xbf16, #tpu.memory_space<vmem>>, vector<1x1x32x32xbf16>
    %145 = vector.shape_cast %144 : vector<1x1x32x32xbf16> to vector<32x32xbf16>
    %146 = arith.truncf %143 : vector<32x128xf32> to vector<32x128xbf16>
    %cst_125 = arith.constant dense<0.000000e+00> : vector<32x128xf32>
    %147 = tpu.matmul %145, %146, %cst_125 {dimension_numbers = #tpu.dot_dimension_numbers<[1], [0], [0], [1], [0, 0, 1, 1], [], []>} : vector<32x32xbf16>, vector<32x128xbf16>, vector<32x128xf32> -> vector<32x128xf32>
    %c3_126 = arith.constant 3 : index
    %c1_127 = arith.constant 1 : index
    %c0_128 = arith.constant 0 : index
    %c0_129 = arith.constant 0 : index
    %148 = vector.load %arg5[%c3_126, %c1_127, %c0_128, %c0_129] : memref<4x2x32x1xf32, #tpu.memory_space<vmem>>, vector<1x1x32x1xf32>
    %149 = vector.shape_cast %148 : vector<1x1x32x1xf32> to vector<32x1xf32>
    %150 = vector.broadcast %149 : vector<32x1xf32> to vector<32x128xf32>
    %151 = arith.addf %147, %150 : vector<32x128xf32>
    %cst_130 = arith.constant 0.000000e+00 : f32
    %152 = vector.broadcast %cst_130 : f32 to vector<32x128xf32>
    %153 = arith.maximumf %151, %152 : vector<32x128xf32>
    %c3_131 = arith.constant 3 : index
    %c0_132 = arith.constant 0 : index
    %c0_133 = arith.constant 0 : index
    %154 = vector.load %arg6[%c3_131, %c0_132, %c0_133] : memref<4x16x32xbf16, #tpu.memory_space<vmem>>, vector<1x16x32xbf16>
    %155 = vector.shape_cast %154 : vector<1x16x32xbf16> to vector<16x32xbf16>
    %156 = arith.truncf %153 : vector<32x128xf32> to vector<32x128xbf16>
    %cst_134 = arith.constant dense<0.000000e+00> : vector<16x128xf32>
    %157 = tpu.matmul %155, %156, %cst_134 {dimension_numbers = #tpu.dot_dimension_numbers<[1], [0], [0], [1], [0, 0, 1, 1], [], []>} : vector<16x32xbf16>, vector<32x128xbf16>, vector<16x128xf32> -> vector<16x128xf32>
    %c3_135 = arith.constant 3 : index
    %c0_136 = arith.constant 0 : index
    %c0_137 = arith.constant 0 : index
    %158 = vector.load %arg7[%c3_135, %c0_136, %c0_137] : memref<4x16x1xf32, #tpu.memory_space<vmem>>, vector<1x16x1xf32>
    %159 = vector.shape_cast %158 : vector<1x16x1xf32> to vector<16x1xf32>
    %160 = vector.broadcast %159 : vector<16x1xf32> to vector<16x128xf32>
    %161 = arith.addf %157, %160 : vector<16x128xf32>
    %162 = arith.addf %123, %161 : vector<16x128xf32>
    %163 = arith.mulf %162, %162 : vector<16x128xf32>
    %c0_138 = arith.constant 0 : index
    %c0_139 = arith.constant 0 : index
    %164 = vector.load %arg8[%c0_138, %c0_139] : memref<16x1xf32, #tpu.memory_space<vmem>>, vector<16x1xf32>
    %165 = vector.broadcast %164 : vector<16x1xf32> to vector<16x128xf32>
    %166 = arith.mulf %163, %165 : vector<16x128xf32>
    %cst_140 = arith.constant dense<0.000000e+00> : vector<128xf32>
    %167 = vector.multi_reduction <add>, %166, %cst_140 [0] : vector<16x128xf32> to vector<128xf32>
    %168 = vector.shape_cast %167 : vector<128xf32> to vector<1x128xf32>
    %c0_141 = arith.constant 0 : index
    %c0_142 = arith.constant 0 : index
    %169 = vector.load %arg9[%c0_141, %c0_142] : memref<1x128xf32, #tpu.memory_space<vmem>>, vector<1x128xf32>
    tpu.vector_store %arg9[%c0_141, %c0_142], %168 {strides = array<i32>} : memref<1x128xf32, #tpu.memory_space<vmem>>, vector<1x128xf32>,
    return
  }
  func.func @transform_0(%arg0: i32) -> (i32, i32) {
    %c0_i32 = arith.constant 0 : i32
    %c0_i32_0 = arith.constant 0 : i32
    return %arg0, %c0_i32 : i32, i32
  }
  func.func @transform_1(%arg0: i32) -> (i32, i32, i32) {
    %c0_i32 = arith.constant 0 : i32
    %c0_i32_0 = arith.constant 0 : i32
    %c0_i32_1 = arith.constant 0 : i32
    %c0_i32_2 = arith.constant 0 : i32
    return %c0_i32, %c0_i32_0, %c0_i32_1 : i32, i32, i32
  }
  func.func @transform_2(%arg0: i32) -> (i32, i32, i32) {
    %c0_i32 = arith.constant 0 : i32
    %c0_i32_0 = arith.constant 0 : i32
    %c0_i32_1 = arith.constant 0 : i32
    %c0_i32_2 = arith.constant 0 : i32
    return %c0_i32, %c0_i32_0, %c0_i32_1 : i32, i32, i32
  }
  func.func @transform_3(%arg0: i32) -> (i32, i32, i32, i32) {
    %c0_i32 = arith.constant 0 : i32
    %c0_i32_0 = arith.constant 0 : i32
    %c0_i32_1 = arith.constant 0 : i32
    %c0_i32_2 = arith.constant 0 : i32
    %c0_i32_3 = arith.constant 0 : i32
    return %c0_i32, %c0_i32_0, %c0_i32_1, %c0_i32_2 : i32, i32, i32, i32
  }
  func.func @transform_4(%arg0: i32) -> (i32, i32, i32, i32) {
    %c0_i32 = arith.constant 0 : i32
    %c0_i32_0 = arith.constant 0 : i32
    %c0_i32_1 = arith.constant 0 : i32
    %c0_i32_2 = arith.constant 0 : i32
    %c0_i32_3 = arith.constant 0 : i32
    return %c0_i32, %c0_i32_0, %c0_i32_1, %c0_i32_2 : i32, i32, i32, i32
  }
  func.func @transform_5(%arg0: i32) -> (i32, i32, i32) {
    %c0_i32 = arith.constant 0 : i32
    %c0_i32_0 = arith.constant 0 : i32
    %c0_i32_1 = arith.constant 0 : i32
    %c0_i32_2 = arith.constant 0 : i32
    return %c0_i32, %c0_i32_0, %c0_i32_1 : i32, i32, i32
  }
  func.func @transform_6(%arg0: i32) -> (i32, i32, i32) {
    %c0_i32 = arith.constant 0 : i32
    %c0_i32_0 = arith.constant 0 : i32
    %c0_i32_1 = arith.constant 0 : i32
    %c0_i32_2 = arith.constant 0 : i32
    return %c0_i32, %c0_i32_0, %c0_i32_1 : i32, i32, i32
  }
  func.func @transform_7(%arg0: i32) -> (i32, i32) {
    %c0_i32 = arith.constant 0 : i32
    %c0_i32_0 = arith.constant 0 : i32
    %c0_i32_1 = arith.constant 0 : i32
    return %c0_i32, %c0_i32_0 : i32, i32
  }
  func.func @transform_8(%arg0: i32) -> (i32, i32) {
    %c0_i32 = arith.constant 0 : i32
    %c0_i32_0 = arith.constant 0 : i32
    return %c0_i32, %arg0 : i32, i32
  }
}

</mosaic_0001>

<bundles_post_ra>
// kernel: nice_log_prob.1
= control target key start
LH: loop header
LB: loop body
LE: loop exit
PB: predicated region body
PF: predicated region fallthrough
CT: control target
= control target key end

     0   :  { %vm57_vm0 = vcmask 130048   ;;  %v46_v0 = vlaneseq  ;;  %v2124_v3 = vmov 0   ;;  %v2125_v7 = vmov 0.0   ;;  %s2601_s0 = inlined_call_operand.vmem [shape: f32[128,16], index: 0, kind: input, shape index: {}]   ;;  %s2602_s2 = inlined_call_operand.vmem [shape: f32[4,32,1], index: 2, kind: input, shape index: {}]   ;;  %s2603_s4 = inlined_call_operand.vmem [shape: f32[4,2,32,1], index: 4, kind: input, shape index: {}]   ;;  %s2604_s6 = inlined_call_operand.vmem [shape: f32[4,16,1], index: 6, kind: input, shape index: {}]   ;;  %s2605_s1 = inlined_call_operand.vmem [shape: bf16[4,32,16], index: 1, kind: input, shape index: {}]   ;;  %s2606_s7 = inlined_call_operand.vmem [shape: f32[16,1], index: 7, kind: input, shape index: {}]   ;;  %s2607_s3 = inlined_call_operand.vmem [shape: bf16[4,2,32,32], index: 3, kind: input, shape index: {}]   ;;  %s2608_s5 = inlined_call_operand.vmem [shape: bf16[4,16,32], index: 5, kind: input, shape index: {}]   ;;  %s2609_s8 = inlined_call_operand.vmem [shape: f32[1,128], index: 8, kind: output, shape index: {}]  }
   0x1   :  { %v45_v1 = vld [vmem:[%s2601_s0 + $0x78] sm:$0xff]  ;;  %v44_v2 = vld [vmem:[%s2601_s0 + $0x70] sm:$0xff]  ;;  %2094 = vset.pattern.permute.xlu0 %v2124_v3  ;;  %2095 = vset.pattern.permute.xlu1 %v2124_v3  ;;  %v43_v6 = vld [vmem:[%s2601_s0 + $0x68] sm:$0xff]  ;;  %vm325_vm3 = vcmask 261120   ;;  %vm2126_vm4 = vmmov 0  }
   0x2   :  { %1936 = vmatprep.subr.msk.mxu0 %vm57_vm0, %v45_v1  ;;  %v2179_v4 = vshrl.u32 %v46_v0, 7  ;;  %v2181_v5 = vand.u32 127, %v46_v0  ;;  %v194_v9 = vld [vmem:[%s2602_s2 + $0x10] sm:$0xff]  ;;  %v192_v10 = vld [vmem:[%s2602_s2] sm:$0xff]  ;;  %v195_v11 = vld [vmem:[%s2602_s2 + $0x18] sm:$0xff] }
   0x3   :  { %1937 = vmatpush3.xpose.msk.msra.mxu0 %vm57_vm0, %v45_v1  ;;  %208 = vperm.xlu0 %2094, %v194_v9   ;;  %v42_v12 = vld [vmem:[%s2601_s0 + $0x60] sm:$0xff]  ;;  %v193_v13 = vld [vmem:[%s2602_s2 + $0x8] sm:$0xff]  ;;  %v293_v14 = vld [vmem:[%s2603_s4 + $0x10] sm:$0xff] }
   0x4   :  { %1938 = vmatprep.subr.msk.mxu0 %vm57_vm0, %v44_v2  ;;  %vm51_vm1 = vcmp.eq.s32.totalorder %v2179_v4, %v2181_v5  ;;  %198 = vperm.xlu1 %2095, %v192_v10   ;;  %v41_v15 = vld [vmem:[%s2601_s0 + $0x58] sm:$0xff]  ;;  %v291_v17 = vld [vmem:[%s2603_s4] sm:$0xff]  ;;  %v40_v18 = vld [vmem:[%s2601_s0 + $0x50] sm:$0xff]  ;;  %v48_v38 = vadd.s32 8, %v2179_v4 }
   0x5   :  { %v1694_v8 = vsel %vm51_vm1, 1.0, %v2125_v7  ;;  %v294_v16 = vld [vmem:[%s2603_s4 + $0x18] sm:$0xff]  ;;  %v292_v19 = vld [vmem:[%s2603_s4 + $0x8] sm:$0xff]  ;;  %v1728_v20 = vld [vmem:[%s2603_s4 + $0x30] sm:$0xff] }
   0x6   :  { %1968 = vmatprep.mubr.msk.f32.mxu0 %vm57_vm0, %v1694_v8  ;;  %v39_v21 = vld [vmem:[%s2601_s0 + $0x48] sm:$0xff]  ;;  %v1729_v22 = vld [vmem:[%s2603_s4 + $0x38] sm:$0xff]  ;;  %v1726_v23 = vld [vmem:[%s2603_s4 + $0x20] sm:$0xff]  ;;  %vm52_vm2 = vcmp.eq.s32.totalorder %v48_v38, %v2181_v5 }
   0x7   :  { %1939 = vmatpush3.xpose.msk.msra.mxu0 %vm57_vm0, %v44_v2  ;;  %213 = vperm.xlu0 %2094, %v195_v11   ;;  %v38_v24 = vld [vmem:[%s2601_s0 + $0x40] sm:$0xff]  ;;  %v1727_v25 = vld [vmem:[%s2603_s4 + $0x28] sm:$0xff]  ;;  %v37_v27 = vld [vmem:[%s2601_s0 + $0x38] sm:$0xff]  ;;  %v1695_v40 = vsel %vm52_vm2, 1.0, %v2125_v7 }
   0x8   :  { %1940 = vmatprep.subr.msk.mxu0 %vm57_vm0, %v43_v6  ;;  %203 = vperm.xlu1 %2095, %v193_v13   ;;  %v490_v26 = vld [vmem:[%s2604_s6] sm:$0xff]  ;;  %v491_v28 = vld [vmem:[%s2604_s6 + $0x8] sm:$0xff]  ;;  %v1742_v29 = vld [vmem:[%s2602_s2 + $0x30] sm:$0xff] }
   0x9   :  { %v36_v30 = vld [vmem:[%s2601_s0 + $0x30] sm:$0xff]  ;;  %v1743_v31 = vld [vmem:[%s2602_s2 + $0x38] sm:$0xff]  ;;  %v1740_v32 = vld [vmem:[%s2602_s2 + $0x20] sm:$0xff] }
   0xa   :  { %v35_v33 = vld [vmem:[%s2601_s0 + $0x28] sm:$0xff]  ;;  %v34_v34 = vld [vmem:[%s2601_s0 + $0x20] sm:$0xff]  ;;  %v33_v35 = vld [vmem:[%s2601_s0 + $0x18] sm:$0xff] }
   0xb   :  { %1941 = vmatpush3.xpose.msk.msra.mxu0 %vm57_vm0, %v43_v6  ;;  %307 = vperm.xlu0 %2094, %v293_v14   ;;  %v32_v36 = vld [vmem:[%s2601_s0 + $0x10] sm:$0xff]  ;;  %v31_v37 = vld [vmem:[%s2601_s0 + $0x8] sm:$0xff]  ;;  %v30_v39 = vld [vmem:[%s2601_s0] sm:$0xff] }
   0xc   :  { %1942 = vmatprep.subr.msk.mxu0 %vm57_vm0, %v42_v12  ;;  %312 = vperm.xlu1 %2095, %v294_v16   ;;  %v1754_v41 = vld [vmem:[%s2603_s4 + $0x50] sm:$0xff]  ;;  %v1741_v42 = vld [vmem:[%s2602_s2 + $0x28] sm:$0xff]  ;;  %v1752_v43 = vld [vmem:[%s2603_s4 + $0x40] sm:$0xff] }
   0xd   :  { %v1755_v44 = vld [vmem:[%s2603_s4 + $0x58] sm:$0xff]  ;;  %v2096_v45 = vld [vmem:[%s2605_s1] sm:$0xff]   ;;  %v1766_v46 = vld [vmem:[%s2603_s4 + $0x70] sm:$0xff] }
   0xe   :  { %1973 = vmatprep.mubr.msk.bf16.mxu1 %vm57_vm0, %v2096_v45  ;;  %v1753_v47 = vld [vmem:[%s2603_s4 + $0x48] sm:$0xff]  ;;  %v1764_v48 = vld [vmem:[%s2603_s4 + $0x60] sm:$0xff]  ;;  %v1767_v49 = vld [vmem:[%s2603_s4 + $0x78] sm:$0xff] }
   0xf   :  { %1943 = vmatpush3.xpose.msk.msra.mxu0 %vm57_vm0, %v42_v12  ;;  %297 = vperm.xlu0 %2094, %v291_v17   ;;  %v1774_v50 = vld [vmem:[%s2604_s6 + $0x10] sm:$0xff]  ;;  %v1765_v51 = vld [vmem:[%s2603_s4 + $0x68] sm:$0xff]  ;;  %v1775_v53 = vld [vmem:[%s2604_s6 + $0x18] sm:$0xff] }
  0x10   :  { %1944 = vmatprep.subr.msk.mxu0 %vm57_vm0, %v41_v15  ;;  %302 = vperm.xlu1 %2095, %v292_v19   ;;  %v1784_v52 = vld [vmem:[%s2602_s2 + $0x50] sm:$0xff]  ;;  %v1782_v54 = vld [vmem:[%s2602_s2 + $0x40] sm:$0xff]  ;;  %v1785_v55 = vld [vmem:[%s2602_s2 + $0x58] sm:$0xff] }
  0x11   :  { %v1796_v56 = vld [vmem:[%s2603_s4 + $0x90] sm:$0xff]  ;;  %v1783_v57 = vld [vmem:[%s2602_s2 + $0x48] sm:$0xff]  ;;  %v1794_v58 = vld [vmem:[%s2603_s4 + $0x80] sm:$0xff] }
  0x12   :  { %v1797_v59 = vld [vmem:[%s2603_s4 + $0x98] sm:$0xff]  ;;  %v1808_v60 = vld [vmem:[%s2603_s4 + $0xb0] sm:$0xff]  ;;  %v1795_v61 = vld [vmem:[%s2603_s4 + $0x88] sm:$0xff] }
  0x13   :  { %1945 = vmatpush3.xpose.msk.msra.mxu0 %vm57_vm0, %v41_v15  ;;  %409 = vperm.xlu0 %2094, %v1728_v20   ;;  %v1806_v62 = vld [vmem:[%s2603_s4 + $0xa0] sm:$0xff]  ;;  %v1809_v63 = vld [vmem:[%s2603_s4 + $0xb8] sm:$0xff]  ;;  %v1807_v1 = vld [vmem:[%s2603_s4 + $0xa8] sm:$0xff] }
  0x14   :  { %1946 = vmatprep.subr.msk.mxu0 %vm57_vm0, %v40_v18  ;;  %414 = vperm.xlu1 %2095, %v1729_v22   ;;  %v1816_v0 = vld [vmem:[%s2604_s6 + $0x20] sm:$0xff]  ;;  %v1826_v2 = vld [vmem:[%s2602_s2 + $0x70] sm:$0xff]  ;;  %v1817_v3 = vld [vmem:[%s2604_s6 + $0x28] sm:$0xff] }
  0x15   :  { %v1824_v4 = vld [vmem:[%s2602_s2 + $0x60] sm:$0xff]  ;;  %v1827_v5 = vld [vmem:[%s2602_s2 + $0x78] sm:$0xff]  ;;  %v1838_v6 = vld [vmem:[%s2603_s4 + $0xd0] sm:$0xff] }
  0x16   :  { %v1825_v8 = vld [vmem:[%s2602_s2 + $0x68] sm:$0xff]  ;;  %v1836_v9 = vld [vmem:[%s2603_s4 + $0xc0] sm:$0xff]  ;;  %v1839_v10 = vld [vmem:[%s2603_s4 + $0xd8] sm:$0xff] }
  0x17   :  { %1947 = vmatpush3.xpose.msk.msra.mxu0 %vm57_vm0, %v40_v18  ;;  %399 = vperm.xlu0 %2094, %v1726_v23   ;;  %v1850_v11 = vld [vmem:[%s2603_s4 + $0xf0] sm:$0xff]  ;;  %v1837_v12 = vld [vmem:[%s2603_s4 + $0xc8] sm:$0xff]  ;;  %v1848_v13 = vld [vmem:[%s2603_s4 + $0xe0] sm:$0xff] }
  0x18   :  { %1948 = vmatprep.subr.msk.mxu0 %vm57_vm0, %v39_v21  ;;  %404 = vperm.xlu1 %2095, %v1727_v25   ;;  %v1851_v14 = vld [vmem:[%s2603_s4 + $0xf8] sm:$0xff]  ;;  %v1858_v15 = vld [vmem:[%s2604_s6 + $0x30] sm:$0xff]  ;;  %v1849_v16 = vld [vmem:[%s2603_s4 + $0xe8] sm:$0xff] }
  0x19   :  { %v1668_v17 = vld [vmem:[%s2606_s7] sm:$0xff]  ;;  %v1859_v18 = vld [vmem:[%s2604_s6 + $0x38] sm:$0xff]  ;;  %v1669_v19 = vld [vmem:[%s2606_s7 + $0x8] sm:$0xff] }
  0x1a   :  { %v2097_v23 = vld [vmem:[%s2605_s1 + $0x8] sm:$0xff]  }
  0x1b   :  { %1949 = vmatpush3.xpose.msk.msra.mxu0 %vm57_vm0, %v39_v21  ;;  %494 = vperm.xlu0 %2094, %v490_v26  }
  0x1c   :  { %1950 = vmatprep.subr.msk.mxu0 %vm57_vm0, %v38_v24  ;;  %499 = vperm.xlu1 %2095, %v491_v28  }
  0x1f   :  { %1951 = vmatpush3.xpose.msk.msra.mxu0 %vm57_vm0, %v38_v24  ;;  %576 = vperm.xlu0 %2094, %v1742_v29   ;;  %v2098_v24 = vld [vmem:[%s2607_s3] sm:$0xff]  }
  0x20   :  { %1952 = vmatprep.subr.msk.mxu0 %vm57_vm0, %v37_v27  ;;  %581 = vperm.xlu1 %2095, %v1743_v31  }
  0x23   :  { %1953 = vmatpush3.xpose.msk.msra.mxu0 %vm57_vm0, %v37_v27  ;;  %566 = vperm.xlu0 %2094, %v1740_v32  }
  0x24   :  { %1954 = vmatprep.subr.msk.mxu0 %vm57_vm0, %v36_v30  ;;  %571 = vperm.xlu1 %2095, %v1741_v42  }
  0x27   :  { %1955 = vmatpush3.xpose.msk.msra.mxu0 %vm57_vm0, %v36_v30  ;;  %677 = vperm.xlu0 %2094, %v1754_v41  }
  0x28   :  { %1956 = vmatprep.subr.msk.mxu0 %vm57_vm0, %v35_v33  ;;  %682 = vperm.xlu1 %2095, %v1755_v44   ;;  %v2100_v44 = vld [vmem:[%s2607_s3 + $0x10] sm:$0xff]  }
  0x2b   :  { %1957 = vmatpush3.xpose.msk.msra.mxu0 %vm57_vm0, %v35_v33  ;;  %667 = vperm.xlu0 %2094, %v1752_v43   ;;  %v2099_v43 = vld [vmem:[%s2607_s3 + $0x8] sm:$0xff]  }
  0x2c   :  { %1958 = vmatprep.subr.msk.mxu0 %vm57_vm0, %v34_v34  ;;  %672 = vperm.xlu1 %2095, %v1753_v47  }
  0x2f   :  { %1959 = vmatpush3.xpose.msk.msra.mxu0 %vm57_vm0, %v34_v34  ;;  %778 = vperm.xlu0 %2094, %v1766_v46  }
  0x30   :  { %1960 = vmatprep.subr.msk.mxu0 %vm57_vm0, %v33_v35  ;;  %783 = vperm.xlu1 %2095, %v1767_v49  }
  0x33   :  { %1961 = vmatpush3.xpose.msk.msra.mxu0 %vm57_vm0, %v33_v35  ;;  %768 = vperm.xlu0 %2094, %v1764_v48  }
  0x34   :  { %1962 = vmatprep.subr.msk.mxu0 %vm57_vm0, %v32_v36  ;;  %773 = vperm.xlu1 %2095, %v1765_v51  }
  0x37   :  { %1963 = vmatpush3.xpose.msk.msra.mxu0 %vm57_vm0, %v32_v36  ;;  %865 = vperm.xlu0 %2094, %v1774_v50  }
  0x38   :  { %1964 = vmatprep.subr.msk.mxu0 %vm57_vm0, %v31_v37  ;;  %870 = vperm.xlu1 %2095, %v1775_v53  }
  0x3b   :  { %1965 = vmatpush3.xpose.msk.msra.mxu0 %vm57_vm0, %v31_v37  ;;  %947 = vperm.xlu0 %2094, %v1784_v52  }
  0x3c   :  { %1966 = vmatprep.subr.msk.mxu0 %vm57_vm0, %v30_v39  ;;  %952 = vperm.xlu1 %2095, %v1785_v55  }
  0x3f   :  { %1967 = vmatpush3.xpose.msk.msra.mxu0 %vm57_vm0, %v30_v39  ;;  %937 = vperm.xlu0 %2094, %v1782_v54  }
  0x40   :  { %942 = vperm.xlu1 %2095, %v1783_v57  }
  0x42   :  { %1969 = vmatmul.mubr.msk.f32.vlgmr.msra.gmra.mxu0 %vm57_vm0, %v1695_v40 }
  0x43   :  { %1048 = vperm.xlu0 %2094, %v1796_v56  }
  0x44   :  { %1053 = vperm.xlu1 %2095, %v1797_v59  }
  0x47   :  { %1038 = vperm.xlu0 %2094, %v1794_v58  }
  0x48   :  { %1043 = vperm.xlu1 %2095, %v1795_v61  }
  0x4b   :  { %1149 = vperm.xlu0 %2094, %v1808_v60  }
  0x4c   :  { %1154 = vperm.xlu1 %2095, %v1809_v63   ;;  %v2101_v63 = vld [vmem:[%s2607_s3 + $0x18] sm:$0xff]  }
  0x4f   :  { %1139 = vperm.xlu0 %2094, %v1806_v62  }
  0x50   :  { %1144 = vperm.xlu1 %2095, %v1807_v1  }
  0x53   :  { %1236 = vperm.xlu0 %2094, %v1816_v0  }
  0x54   :  { %1241 = vperm.xlu1 %2095, %v1817_v3  }
  0x57   :  { %1318 = vperm.xlu0 %2094, %v1826_v2  }
  0x58   :  { %1323 = vperm.xlu1 %2095, %v1827_v5  }
  0x5b   :  { %1308 = vperm.xlu0 %2094, %v1824_v4  }
  0x5c   :  { %1313 = vperm.xlu1 %2095, %v1825_v8  }
  0x5f   :  { %1419 = vperm.xlu0 %2094, %v1838_v6  }
  0x60   :  { %1424 = vperm.xlu1 %2095, %v1839_v10  }
  0x63   :  { %1409 = vperm.xlu0 %2094, %v1836_v9  }
  0x64   :  { %1414 = vperm.xlu1 %2095, %v1837_v12  }
  0x67   :  { %1520 = vperm.xlu0 %2094, %v1850_v11  }
  0x68   :  { %1525 = vperm.xlu1 %2095, %v1851_v14  }
  0x6b   :  { %1510 = vperm.xlu0 %2094, %v1848_v13  }
  0x6c   :  { %1515 = vperm.xlu1 %2095, %v1849_v16  }
  0x6f   :  { %1607 = vperm.xlu0 %2094, %v1858_v15  }
  0x70   :  { %1612 = vperm.xlu1 %2095, %v1859_v18  }
  0x73   :  { %1672 = vperm.xlu0 %2094, %v1668_v17  }
  0x74   :  { %1677 = vperm.xlu1 %2095, %v1669_v19   ;;  %v2102_v19 = vld [vmem:[%s2608_s5] sm:$0xff]  }
  0x7e   :  { %v209_v25 = vpop.permute.xlu0 %208 }
  0x7f   :  { %v199_v26 = vpop.permute.xlu1 %198 }
  0x82   :  { %v214_v30 = vpop.permute.xlu0 %213 }
  0x83   :  { %v204_v34 = vpop.permute.xlu1 %203 }
  0x86   :  { %v308_v45 = vpop.permute.xlu0 %307 }
  0x87   :  { %v313_v46 = vpop.permute.xlu1 %312 }
  0x8a   :  { %v298_v50 = vpop.permute.xlu0 %297 }
  0x8b   :  { %v303_v54 = vpop.permute.xlu1 %302 }
  0x8e   :  { %v410_v0 = vpop.permute.xlu0 %409 }
  0x8f   :  { %v415_v1 = vpop.permute.xlu1 %414 }
  0x92   :  { %v400_v6 = vpop.permute.xlu0 %399 }
  0x93   :  { %v405_v9 = vpop.permute.xlu1 %404 }
 0x102   :  { %v2442_v20 = vpop.f32.mrf.mxu0 }
 0x104   :  { %v2444_v21 = vpop.f32.mrf.mxu0 }
 0x105   :  { %v191_v22 = vpack.c.bf16 %v2442_v20, %v2444_v21 }
 0x107   :  { %1971 = vmatprep.subr.bf16.mxu1 %v191_v22 }
 0x108   :  { %1972 = vmatpush3.bf16.msra.mxu1 %v191_v22  ;;  %v2103_v22 = vld [vmem:[%s2605_s1 + $0x10] sm:$0xff]  }
 0x10b   :  { %1974 = vmatmul.mubr.msk.bf16.vlgmr.msra.gmra.mxu1 %vm57_vm0, %v2097_v23 }
 0x10c   :  { %1981 = vmatprep.mubr.msk.bf16.mxu1 %vm325_vm3, %v2098_v24  ;;  %v495_v24 = vpop.permute.xlu0 %494 }
 0x1cb   :  { %v1975_v27 = vpop.f32.mrf.mxu1 }
 0x1cc   :  { %v275_v29 = vadd.f32 %v1975_v27, %v209_v25  ;;  %v500_v27 = vpop.permute.xlu1 %499 }
 0x1cd   :  { %v266_v28 = vpop.f32.mrf.mxu1 }
 0x1ce   :  { %v267_v32 = vadd.f32 %v266_v28, %v199_v26  ;;  %v283_v36 = vmax.f32 %v275_v29, 0.0 }
 0x1cf   :  { %v1976_v31 = vpop.f32.mrf.mxu1 }
 0x1d0   :  { %v278_v33 = vadd.f32 %v1976_v31, %v214_v30  ;;  %v281_v39 = vmax.f32 %v267_v32, 0.0 }
 0x1d1   :  { %v269_v35 = vpop.f32.mrf.mxu1 }
 0x1d2   :  { %v284_v37 = vmax.f32 %v278_v33, 0.0  ;;  %v270_v38 = vadd.f32 %v269_v35, %v204_v34  ;;  %v2104_v34 = vld [vmem:[%s2605_s1 + $0x18] sm:$0xff]   ;;  %v2105_v35 = vld [vmem:[%s2607_s3 + $0x20] sm:$0xff]  }
 0x1d4   :  { %v290_v40 = vpack.c.bf16 %v284_v37, %v283_v36  ;;  %v282_v41 = vmax.f32 %v270_v38, 0.0 }
 0x1d6   :  { %v289_v42 = vpack.c.bf16 %v282_v41, %v281_v39  ;;  %1977 = vmatprep.subr.bf16.mxu1 %v290_v40 }
 0x1d7   :  { %1978 = vmatpush3.bf16.msra.mxu1 %v290_v40 }
 0x1d8   :  { %1979 = vmatprep.subr.bf16.mxu1 %v289_v42 }
 0x1db   :  { %1980 = vmatpush3.bf16.msra.mxu1 %v289_v42 }
 0x1de   :  { %1982 = vmatmul.mubr.msk.bf16.vlgmr.msra.gmra.mxu1 %vm325_vm3, %v2099_v43 }
 0x1df   :  { %1989 = vmatprep.mubr.msk.bf16.mxu1 %vm325_vm3, %v2100_v44 }
 0x29e   :  { %v1983_v47 = vpop.f32.mrf.mxu1 }
 0x29f   :  { %v375_v49 = vadd.f32 %v1983_v47, %v308_v45 }
 0x2a0   :  { %v366_v48 = vpop.f32.mrf.mxu1 }
 0x2a1   :  { %v367_v52 = vadd.f32 %v366_v48, %v298_v50  ;;  %v383_v56 = vmax.f32 %v375_v49, 0.0 }
 0x2a2   :  { %v1984_v51 = vpop.f32.mrf.mxu1 }
 0x2a3   :  { %v378_v53 = vadd.f32 %v1984_v51, %v313_v46  ;;  %v381_v59 = vmax.f32 %v367_v52, 0.0  ;;  %v2106_v52 = vld [vmem:[%s2607_s3 + $0x28] sm:$0xff]  }
 0x2a4   :  { %v369_v55 = vpop.f32.mrf.mxu1 }
 0x2a5   :  { %v384_v57 = vmax.f32 %v378_v53, 0.0  ;;  %v370_v58 = vadd.f32 %v369_v55, %v303_v54  ;;  %v2107_v53 = vld [vmem:[%s2607_s3 + $0x30] sm:$0xff]  }
 0x2a7   :  { %v391_v60 = vpack.c.bf16 %v384_v57, %v383_v56  ;;  %v382_v61 = vmax.f32 %v370_v58, 0.0 }
 0x2a9   :  { %v390_v62 = vpack.c.bf16 %v382_v61, %v381_v59  ;;  %1985 = vmatprep.subr.bf16.mxu1 %v391_v60 }
 0x2aa   :  { %1986 = vmatpush3.bf16.msra.mxu1 %v391_v60 }
 0x2ab   :  { %1987 = vmatprep.subr.bf16.mxu1 %v390_v62 }
 0x2ae   :  { %1988 = vmatpush3.bf16.msra.mxu1 %v390_v62 }
 0x2af   :  { %1993 = vmatprep.subr.bf16.mxu1 %v2125_v7 }
 0x2b1   :  { %1990 = vmatmul.mubr.msk.bf16.vlgmr.msra.gmra.mxu1 %vm325_vm3, %v2101_v63 }
 0x2b2   :  { %1997 = vmatprep.mubr.msk.bf16.mxu1 %vm2126_vm4, %v2125_v7 }
 0x371   :  { %v1991_v2 = vpop.f32.mrf.mxu1 }
 0x372   :  { %v476_v4 = vadd.f32 %v1991_v2, %v410_v0 }
 0x373   :  { %v467_v3 = vpop.f32.mrf.mxu1 }
 0x374   :  { %v484_v11 = vmax.f32 %v476_v4, 0.0  ;;  %v468_v12 = vadd.f32 %v467_v3, %v400_v6 }
 0x375   :  { %v1992_v5 = vpop.f32.mrf.mxu1 }
 0x376   :  { %v479_v8 = vadd.f32 %v1992_v5, %v415_v1  ;;  %v482_v17 = vmax.f32 %v468_v12, 0.0 }
 0x377   :  { %v470_v10 = vpop.f32.mrf.mxu1 }
 0x378   :  { %v485_v13 = vmax.f32 %v479_v8, 0.0  ;;  %v471_v14 = vadd.f32 %v470_v10, %v405_v9  ;;  %v2108_v9 = vld [vmem:[%s2607_s3 + $0x38] sm:$0xff]  }
 0x37a   :  { %v489_v15 = vpack.c.bf16 %v485_v13, %v484_v11  ;;  %v483_v16 = vmax.f32 %v471_v14, 0.0 }
 0x37c   :  { %1994 = vmatpush3.bf16.msra.mxu1 %v489_v15  ;;  %v488_v18 = vpack.c.bf16 %v483_v16, %v482_v17 }
 0x37d   :  { %1995 = vmatprep.subr.bf16.mxu1 %v2125_v7 }
 0x380   :  { %1996 = vmatpush3.bf16.msra.mxu1 %v488_v18 }
 0x383   :  { %1998 = vmatmul.mubr.msk.bf16.vlgmr.msra.gmra.mxu1 %vm325_vm3, %v2102_v19 }
 0x384   :  { %2003 = vmatprep.mubr.msk.bf16.mxu1 %vm57_vm0, %v2103_v22 }
 0x443   :  { %v544_v23 = vpop.f32.mrf.mxu1 }
 0x444   :  { %v545_v26 = vadd.f32 %v544_v23, %v495_v24 }
 0x445   :  { %v1999_v25 = vpop.f32.mrf.mxu1 }
 0x446   :  { %v2481_v31 = vadd.f32 %v545_v26, %v2444_v21  ;;  %v577_v21 = vpop.permute.xlu0 %576 }
 0x447   :  { %v547_v28 = vpop.f32.mrf.mxu1 }
 0x448   :  { %v548_v29 = vadd.f32 %v547_v28, %v500_v27 }
 0x449   :  { %v2000_v30 = vpop.f32.mrf.mxu1 }
 0x44a   :  { %v2484_v32 = vadd.f32 %v2442_v20, %v548_v29  ;;  %v582_v20 = vpop.permute.xlu1 %581  ;;  %v567_v39 = vpop.permute.xlu0 %566  ;;  %v2109_v30 = vld [vmem:[%s2608_s5 + $0x8] sm:$0xff]  }
 0x44c   :  { %v558_v33 = vpack.c.bf16 %v2484_v32, %v2481_v31 }
 0x44e   :  { %2001 = vmatprep.subr.bf16.mxu1 %v558_v33  ;;  %v572_v43 = vpop.permute.xlu1 %571  ;;  %v678_v54 = vpop.permute.xlu0 %677 }
 0x44f   :  { %2002 = vmatpush3.bf16.msra.mxu1 %v558_v33  ;;  %v2110_v33 = vld [vmem:[%s2605_s1 + $0x20] sm:$0xff]  }
 0x450   :  { %2033 = vmatprep.mubr.msk.bf16.mxu0 %vm57_vm0, %v2110_v33 }
 0x452   :  { %2004 = vmatmul.mubr.msk.bf16.vlgmr.msra.gmra.mxu1 %vm57_vm0, %v2104_v34  ;;  %v683_v55 = vpop.permute.xlu1 %682  ;;  %v668_v59 = vpop.permute.xlu0 %667 }
 0x453   :  { %2011 = vmatprep.mubr.msk.bf16.mxu1 %vm325_vm3, %v2105_v35 }
 0x456   :  { %v673_v63 = vpop.permute.xlu1 %672  ;;  %v779_v10 = vpop.permute.xlu0 %778 }
 0x45a   :  { %v784_v11 = vpop.permute.xlu1 %783  ;;  %v769_v16 = vpop.permute.xlu0 %768 }
 0x45e   :  { %v774_v18 = vpop.permute.xlu1 %773  ;;  %v866_v35 = vpop.permute.xlu0 %865 }
 0x512   :  { %v2005_v36 = vpop.f32.mrf.mxu1 }
 0x513   :  { %v643_v38 = vadd.f32 %v2005_v36, %v577_v21  ;;  %v871_v36 = vpop.permute.xlu1 %870 }
 0x514   :  { %v634_v37 = vpop.f32.mrf.mxu1 }
 0x515   :  { %v635_v41 = vadd.f32 %v634_v37, %v567_v39  ;;  %v651_v45 = vmax.f32 %v643_v38, 0.0 }
 0x516   :  { %v2006_v40 = vpop.f32.mrf.mxu1 }
 0x517   :  { %v646_v42 = vadd.f32 %v2006_v40, %v582_v20  ;;  %v649_v48 = vmax.f32 %v635_v41, 0.0 }
 0x518   :  { %v637_v44 = vpop.f32.mrf.mxu1 }
 0x519   :  { %v652_v46 = vmax.f32 %v646_v42, 0.0  ;;  %v638_v47 = vadd.f32 %v637_v44, %v572_v43  ;;  %v2111_v43 = vld [vmem:[%s2605_s1 + $0x28] sm:$0xff]   ;;  %v2112_v44 = vld [vmem:[%s2607_s3 + $0x40] sm:$0xff]  }
 0x51b   :  { %v659_v49 = vpack.c.bf16 %v652_v46, %v651_v45  ;;  %v650_v50 = vmax.f32 %v638_v47, 0.0 }
 0x51d   :  { %v658_v51 = vpack.c.bf16 %v650_v50, %v649_v48  ;;  %2007 = vmatprep.subr.bf16.mxu1 %v659_v49 }
 0x51e   :  { %2008 = vmatpush3.bf16.msra.mxu1 %v659_v49 }
 0x51f   :  { %2009 = vmatprep.subr.bf16.mxu1 %v658_v51 }
 0x522   :  { %2010 = vmatpush3.bf16.msra.mxu1 %v658_v51 }
 0x525   :  { %2012 = vmatmul.mubr.msk.bf16.vlgmr.msra.gmra.mxu1 %vm325_vm3, %v2106_v52 }
 0x526   :  { %2019 = vmatprep.mubr.msk.bf16.mxu1 %vm325_vm3, %v2107_v53 }
 0x5e5   :  { %v2013_v56 = vpop.f32.mrf.mxu1 }
 0x5e6   :  { %v744_v58 = vadd.f32 %v2013_v56, %v678_v54 }
 0x5e7   :  { %v735_v57 = vpop.f32.mrf.mxu1 }
 0x5e8   :  { %v736_v61 = vadd.f32 %v735_v57, %v668_v59  ;;  %v752_v1 = vmax.f32 %v744_v58, 0.0 }
 0x5e9   :  { %v2014_v60 = vpop.f32.mrf.mxu1 }
 0x5ea   :  { %v747_v62 = vadd.f32 %v2014_v60, %v683_v55  ;;  %v750_v4 = vmax.f32 %v736_v61, 0.0  ;;  %v2113_v61 = vld [vmem:[%s2607_s3 + $0x48] sm:$0xff]  }
 0x5eb   :  { %v738_v0 = vpop.f32.mrf.mxu1 }
 0x5ec   :  { %v753_v2 = vmax.f32 %v747_v62, 0.0  ;;  %v739_v3 = vadd.f32 %v738_v0, %v673_v63  ;;  %v2114_v62 = vld [vmem:[%s2607_s3 + $0x50] sm:$0xff]  }
 0x5ee   :  { %v760_v5 = vpack.c.bf16 %v753_v2, %v752_v1  ;;  %v751_v6 = vmax.f32 %v739_v3, 0.0 }
 0x5f0   :  { %v759_v8 = vpack.c.bf16 %v751_v6, %v750_v4  ;;  %2015 = vmatprep.subr.bf16.mxu1 %v760_v5 }
 0x5f1   :  { %2016 = vmatpush3.bf16.msra.mxu1 %v760_v5 }
 0x5f2   :  { %2017 = vmatprep.subr.bf16.mxu1 %v759_v8 }
 0x5f5   :  { %2018 = vmatpush3.bf16.msra.mxu1 %v759_v8 }
 0x5f6   :  { %2023 = vmatprep.subr.bf16.mxu1 %v2125_v7 }
 0x5f8   :  { %2020 = vmatmul.mubr.msk.bf16.vlgmr.msra.gmra.mxu1 %vm325_vm3, %v2108_v9 }
 0x5f9   :  { %2027 = vmatprep.mubr.msk.bf16.mxu1 %vm2126_vm4, %v2125_v7 }
 0x6b8   :  { %v2021_v12 = vpop.f32.mrf.mxu1 }
 0x6b9   :  { %v845_v14 = vadd.f32 %v2021_v12, %v779_v10 }
 0x6ba   :  { %v836_v13 = vpop.f32.mrf.mxu1 }
 0x6bb   :  { %v853_v22 = vmax.f32 %v845_v14, 0.0  ;;  %v837_v23 = vadd.f32 %v836_v13, %v769_v16 }
 0x6bc   :  { %v2022_v15 = vpop.f32.mrf.mxu1 }
 0x6bd   :  { %v848_v17 = vadd.f32 %v2022_v15, %v784_v11  ;;  %v851_v28 = vmax.f32 %v837_v23, 0.0 }
 0x6be   :  { %v839_v19 = vpop.f32.mrf.mxu1 }
 0x6bf   :  { %v854_v24 = vmax.f32 %v848_v17, 0.0  ;;  %v840_v25 = vadd.f32 %v839_v19, %v774_v18  ;;  %v2115_v18 = vld [vmem:[%s2607_s3 + $0x58] sm:$0xff]  }
 0x6c1   :  { %v859_v26 = vpack.c.bf16 %v854_v24, %v853_v22  ;;  %v852_v27 = vmax.f32 %v840_v25, 0.0 }
 0x6c3   :  { %2024 = vmatpush3.bf16.msra.mxu1 %v859_v26  ;;  %v858_v29 = vpack.c.bf16 %v852_v27, %v851_v28 }
 0x6c4   :  { %2025 = vmatprep.subr.bf16.mxu1 %v2125_v7 }
 0x6c7   :  { %2026 = vmatpush3.bf16.msra.mxu1 %v858_v29 }
 0x6ca   :  { %2028 = vmatmul.mubr.msk.bf16.vlgmr.msra.gmra.mxu1 %vm325_vm3, %v2109_v30 }
 0x6cb   :  { %2041 = vmatprep.mubr.msk.bf16.mxu1 %vm325_vm3, %v2112_v44 }
 0x78a   :  { %v915_v34 = vpop.f32.mrf.mxu1 }
 0x78b   :  { %v916_v20 = vadd.f32 %v915_v34, %v866_v35 }
 0x78c   :  { %v2029_v21 = vpop.f32.mrf.mxu1 }
 0x78d   :  { %v2521_v40 = vadd.f32 %v916_v20, %v2481_v31  ;;  %v948_v31 = vpop.permute.xlu0 %947 }
 0x78e   :  { %v918_v37 = vpop.f32.mrf.mxu1 }
 0x78f   :  { %v919_v38 = vadd.f32 %v918_v37, %v871_v36 }
 0x790   :  { %v2030_v39 = vpop.f32.mrf.mxu1 }
 0x791   :  { %v2524_v41 = vadd.f32 %v919_v38, %v2484_v32  ;;  %v953_v32 = vpop.permute.xlu1 %952  ;;  %v938_v48 = vpop.permute.xlu0 %937  ;;  %v2116_v39 = vld [vmem:[%s2608_s5 + $0x10] sm:$0xff]  }
 0x793   :  { %v929_v42 = vpack.c.bf16 %v2524_v41, %v2521_v40 }
 0x795   :  { %2031 = vmatprep.subr.bf16.mxu0 %v929_v42  ;;  %v943_v52 = vpop.permute.xlu1 %942  ;;  %v1049_v63 = vpop.permute.xlu0 %1048 }
 0x796   :  { %2032 = vmatpush3.bf16.msra.mxu0 %v929_v42  ;;  %v2117_v42 = vld [vmem:[%s2605_s1 + $0x30] sm:$0xff]  }
 0x799   :  { %2034 = vmatmul.mubr.msk.bf16.vlgmr.msra.gmra.mxu0 %vm57_vm0, %v2111_v43  ;;  %v1054_v0 = vpop.permute.xlu1 %1053  ;;  %v1039_v4 = vpop.permute.xlu0 %1038 }
 0x79a   :  { %2049 = vmatprep.mubr.msk.bf16.mxu0 %vm325_vm3, %v2114_v62 }
 0x79d   :  { %v1044_v9 = vpop.permute.xlu1 %1043  ;;  %v1150_v19 = vpop.permute.xlu0 %1149 }
 0x7a1   :  { %v1155_v22 = vpop.permute.xlu1 %1154  ;;  %v1140_v27 = vpop.permute.xlu0 %1139 }
 0x7a5   :  { %v1145_v29 = vpop.permute.xlu1 %1144  ;;  %v1237_v44 = vpop.permute.xlu0 %1236 }
 0x859   :  { %v2035_v45 = vpop.f32.mrf.mxu0 }
 0x85a   :  { %v1014_v47 = vadd.f32 %v2035_v45, %v948_v31  ;;  %v1242_v45 = vpop.permute.xlu1 %1241 }
 0x85b   :  { %v1005_v46 = vpop.f32.mrf.mxu0 }
 0x85c   :  { %v1006_v50 = vadd.f32 %v1005_v46, %v938_v48  ;;  %v1022_v54 = vmax.f32 %v1014_v47, 0.0 }
 0x85d   :  { %v2036_v49 = vpop.f32.mrf.mxu0 }
 0x85e   :  { %v1017_v51 = vadd.f32 %v2036_v49, %v953_v32  ;;  %v1020_v57 = vmax.f32 %v1006_v50, 0.0 }
 0x85f   :  { %v1008_v53 = vpop.f32.mrf.mxu0 }
 0x860   :  { %v1023_v55 = vmax.f32 %v1017_v51, 0.0  ;;  %v1009_v56 = vadd.f32 %v1008_v53, %v943_v52  ;;  %v2118_v52 = vld [vmem:[%s2605_s1 + $0x38] sm:$0xff]   ;;  %v2119_v53 = vld [vmem:[%s2607_s3 + $0x60] sm:$0xff]  }
 0x862   :  { %v1030_v58 = vpack.c.bf16 %v1023_v55, %v1022_v54  ;;  %v1021_v59 = vmax.f32 %v1009_v56, 0.0 }
 0x864   :  { %v1029_v60 = vpack.c.bf16 %v1021_v59, %v1020_v57  ;;  %2037 = vmatprep.subr.bf16.mxu1 %v1030_v58 }
 0x865   :  { %2038 = vmatpush3.bf16.msra.mxu1 %v1030_v58 }
 0x866   :  { %2039 = vmatprep.subr.bf16.mxu1 %v1029_v60 }
 0x869   :  { %2040 = vmatpush3.bf16.msra.mxu1 %v1029_v60 }
 0x86a   :  { %2053 = vmatprep.subr.bf16.mxu1 %v2125_v7 }
 0x86c   :  { %2042 = vmatmul.mubr.msk.bf16.vlgmr.msra.gmra.mxu1 %vm325_vm3, %v2113_v61 }
 0x86d   :  { %2057 = vmatprep.mubr.msk.bf16.mxu1 %vm2126_vm4, %v2125_v7 }
 0x92c   :  { %v2043_v1 = vpop.f32.mrf.mxu1 }
 0x92d   :  { %v1115_v3 = vadd.f32 %v2043_v1, %v1049_v63 }
 0x92e   :  { %v1106_v2 = vpop.f32.mrf.mxu1 }
 0x92f   :  { %v1107_v6 = vadd.f32 %v1106_v2, %v1039_v4  ;;  %v1123_v11 = vmax.f32 %v1115_v3, 0.0 }
 0x930   :  { %v2044_v5 = vpop.f32.mrf.mxu1 }
 0x931   :  { %v1118_v8 = vadd.f32 %v2044_v5, %v1054_v0  ;;  %v1121_v14 = vmax.f32 %v1107_v6, 0.0  ;;  %v2120_v6 = vld [vmem:[%s2607_s3 + $0x68] sm:$0xff]  }
 0x932   :  { %v1109_v10 = vpop.f32.mrf.mxu1 }
 0x933   :  { %v1124_v12 = vmax.f32 %v1118_v8, 0.0  ;;  %v1110_v13 = vadd.f32 %v1109_v10, %v1044_v9  ;;  %v2121_v8 = vld [vmem:[%s2607_s3 + $0x70] sm:$0xff]  }
 0x935   :  { %v1131_v15 = vpack.c.bf16 %v1124_v12, %v1123_v11  ;;  %v1122_v16 = vmax.f32 %v1110_v13, 0.0 }
 0x937   :  { %v1130_v17 = vpack.c.bf16 %v1122_v16, %v1121_v14  ;;  %2045 = vmatprep.subr.bf16.mxu0 %v1131_v15 }
 0x938   :  { %2046 = vmatpush3.bf16.msra.mxu0 %v1131_v15 }
 0x939   :  { %2047 = vmatprep.subr.bf16.mxu0 %v1130_v17 }
 0x93c   :  { %2048 = vmatpush3.bf16.msra.mxu0 %v1130_v17 }
 0x93f   :  { %2050 = vmatmul.mubr.msk.bf16.vlgmr.msra.gmra.mxu0 %vm325_vm3, %v2115_v18 }
 0x940   :  { %2063 = vmatprep.mubr.msk.bf16.mxu0 %vm57_vm0, %v2117_v42 }
 0x9ff   :  { %v2051_v23 = vpop.f32.mrf.mxu0 }
 0xa00   :  { %v1216_v25 = vadd.f32 %v2051_v23, %v1150_v19 }
 0xa01   :  { %v1207_v24 = vpop.f32.mrf.mxu0 }
 0xa02   :  { %v1224_v33 = vmax.f32 %v1216_v25, 0.0  ;;  %v1208_v34 = vadd.f32 %v1207_v24, %v1140_v27 }
 0xa03   :  { %v2052_v26 = vpop.f32.mrf.mxu0 }
 0xa04   :  { %v1219_v28 = vadd.f32 %v2052_v26, %v1155_v22  ;;  %v1222_v37 = vmax.f32 %v1208_v34, 0.0 }
 0xa05   :  { %v1210_v30 = vpop.f32.mrf.mxu0 }
 0xa06   :  { %v1225_v35 = vmax.f32 %v1219_v28, 0.0  ;;  %v1211_v21 = vadd.f32 %v1210_v30, %v1145_v29  ;;  %v2122_v29 = vld [vmem:[%s2607_s3 + $0x78] sm:$0xff]  }
 0xa08   :  { %v1230_v20 = vpack.c.bf16 %v1225_v35, %v1224_v33  ;;  %v1223_v36 = vmax.f32 %v1211_v21, 0.0 }
 0xa0a   :  { %2054 = vmatpush3.bf16.msra.mxu1 %v1230_v20  ;;  %v1229_v38 = vpack.c.bf16 %v1223_v36, %v1222_v37 }
 0xa0b   :  { %2055 = vmatprep.subr.bf16.mxu1 %v2125_v7 }
 0xa0e   :  { %2056 = vmatpush3.bf16.msra.mxu1 %v1229_v38 }
 0xa11   :  { %2058 = vmatmul.mubr.msk.bf16.vlgmr.msra.gmra.mxu1 %vm325_vm3, %v2116_v39 }
 0xa12   :  { %2071 = vmatprep.mubr.msk.bf16.mxu1 %vm325_vm3, %v2119_v53 }
 0xad1   :  { %v1286_v43 = vpop.f32.mrf.mxu1 }
 0xad2   :  { %v1287_v32 = vadd.f32 %v1286_v43, %v1237_v44 }
 0xad3   :  { %v2059_v31 = vpop.f32.mrf.mxu1 }
 0xad4   :  { %v2561_v49 = vadd.f32 %v1287_v32, %v2521_v40  ;;  %v1319_v40 = vpop.permute.xlu0 %1318 }
 0xad5   :  { %v1289_v46 = vpop.f32.mrf.mxu1 }
 0xad6   :  { %v1290_v47 = vadd.f32 %v1289_v46, %v1242_v45 }
 0xad7   :  { %v2060_v48 = vpop.f32.mrf.mxu1 }
 0xad8   :  { %v2564_v50 = vadd.f32 %v1290_v47, %v2524_v41  ;;  %v1324_v41 = vpop.permute.xlu1 %1323  ;;  %v1309_v57 = vpop.permute.xlu0 %1308  ;;  %v2123_v48 = vld [vmem:[%s2608_s5 + $0x18] sm:$0xff]  }
 0xada   :  { %v1300_v51 = vpack.c.bf16 %v2564_v50, %v2561_v49 }
 0xadc   :  { %2061 = vmatprep.subr.bf16.mxu0 %v1300_v51  ;;  %v1314_v61 = vpop.permute.xlu1 %1313  ;;  %v1420_v9 = vpop.permute.xlu0 %1419 }
 0xadd   :  { %2062 = vmatpush3.bf16.msra.mxu0 %v1300_v51 }
 0xae0   :  { %2064 = vmatmul.mubr.msk.bf16.vlgmr.msra.gmra.mxu0 %vm57_vm0, %v2118_v52  ;;  %v1425_v10 = vpop.permute.xlu1 %1424  ;;  %v1410_v14 = vpop.permute.xlu0 %1409 }
 0xae1   :  { %2079 = vmatprep.mubr.msk.bf16.mxu0 %vm325_vm3, %v2121_v8 }
 0xae4   :  { %v1415_v18 = vpop.permute.xlu1 %1414  ;;  %v1521_v30 = vpop.permute.xlu0 %1520 }
 0xae8   :  { %v1526_v33 = vpop.permute.xlu1 %1525  ;;  %v1511_v36 = vpop.permute.xlu0 %1510 }
 0xaec   :  { %v1516_v38 = vpop.permute.xlu1 %1515  ;;  %v1608_v51 = vpop.permute.xlu0 %1607 }
 0xba0   :  { %v2065_v54 = vpop.f32.mrf.mxu0 }
 0xba1   :  { %v1385_v56 = vadd.f32 %v2065_v54, %v1319_v40  ;;  %v1613_v54 = vpop.permute.xlu1 %1612 }
 0xba2   :  { %v1376_v55 = vpop.f32.mrf.mxu0 }
 0xba3   :  { %v1377_v59 = vadd.f32 %v1376_v55, %v1309_v57  ;;  %v1393_v63 = vmax.f32 %v1385_v56, 0.0 }
 0xba4   :  { %v2066_v58 = vpop.f32.mrf.mxu0 }
 0xba5   :  { %v1388_v60 = vadd.f32 %v2066_v58, %v1324_v41  ;;  %v1391_v2 = vmax.f32 %v1377_v59, 0.0 }
 0xba6   :  { %v1379_v62 = vpop.f32.mrf.mxu0 }
 0xba7   :  { %v1394_v0 = vmax.f32 %v1388_v60, 0.0  ;;  %v1380_v1 = vadd.f32 %v1379_v62, %v1314_v61  ;;  %v1673_v60 = vpop.permute.xlu0 %1672  ;;  %v1678_v61 = vpop.permute.xlu1 %1677 }
 0xba9   :  { %v1401_v3 = vpack.c.bf16 %v1394_v0, %v1393_v63  ;;  %v1392_v4 = vmax.f32 %v1380_v1, 0.0 }
 0xbab   :  { %v1400_v5 = vpack.c.bf16 %v1392_v4, %v1391_v2  ;;  %2067 = vmatprep.subr.bf16.mxu1 %v1401_v3 }
 0xbac   :  { %2068 = vmatpush3.bf16.msra.mxu1 %v1401_v3 }
 0xbad   :  { %2069 = vmatprep.subr.bf16.mxu1 %v1400_v5 }
 0xbb0   :  { %2070 = vmatpush3.bf16.msra.mxu1 %v1400_v5 }
 0xbb1   :  { %2083 = vmatprep.subr.bf16.mxu1 %v2125_v7 }
 0xbb3   :  { %2072 = vmatmul.mubr.msk.bf16.vlgmr.msra.gmra.mxu1 %vm325_vm3, %v2120_v6 }
 0xbb4   :  { %2087 = vmatprep.mubr.msk.bf16.mxu1 %vm2126_vm4, %v2125_v7 }
 0xc73   :  { %v2073_v11 = vpop.f32.mrf.mxu1 }
 0xc74   :  { %v1486_v13 = vadd.f32 %v2073_v11, %v1420_v9 }
 0xc75   :  { %v1477_v12 = vpop.f32.mrf.mxu1 }
 0xc76   :  { %v1478_v16 = vadd.f32 %v1477_v12, %v1410_v14  ;;  %v1494_v22 = vmax.f32 %v1486_v13, 0.0 }
 0xc77   :  { %v2074_v15 = vpop.f32.mrf.mxu1 }
 0xc78   :  { %v1489_v17 = vadd.f32 %v2074_v15, %v1425_v10  ;;  %v1492_v25 = vmax.f32 %v1478_v16, 0.0 }
 0xc79   :  { %v1480_v19 = vpop.f32.mrf.mxu1 }
 0xc7a   :  { %v1495_v23 = vmax.f32 %v1489_v17, 0.0  ;;  %v1481_v24 = vadd.f32 %v1480_v19, %v1415_v18 }
 0xc7c   :  { %v1502_v26 = vpack.c.bf16 %v1495_v23, %v1494_v22  ;;  %v1493_v27 = vmax.f32 %v1481_v24, 0.0 }
 0xc7e   :  { %v1501_v28 = vpack.c.bf16 %v1493_v27, %v1492_v25  ;;  %2075 = vmatprep.subr.bf16.mxu0 %v1502_v26 }
 0xc7f   :  { %2076 = vmatpush3.bf16.msra.mxu0 %v1502_v26 }
 0xc80   :  { %2077 = vmatprep.subr.bf16.mxu0 %v1501_v28 }
 0xc83   :  { %2078 = vmatpush3.bf16.msra.mxu0 %v1501_v28 }
 0xc86   :  { %2080 = vmatmul.mubr.msk.bf16.vlgmr.msra.gmra.mxu0 %vm325_vm3, %v2122_v29 }
 0xd46   :  { %v2081_v34 = vpop.f32.mrf.mxu0 }
 0xd47   :  { %v1587_v21 = vadd.f32 %v2081_v34, %v1521_v30 }
 0xd48   :  { %v1578_v35 = vpop.f32.mrf.mxu0 }
 0xd49   :  { %v1595_v42 = vmax.f32 %v1587_v21, 0.0  ;;  %v1579_v43 = vadd.f32 %v1578_v35, %v1511_v36 }
 0xd4a   :  { %v2082_v20 = vpop.f32.mrf.mxu0 }
 0xd4b   :  { %v1590_v37 = vadd.f32 %v2082_v20, %v1526_v33  ;;  %v1593_v46 = vmax.f32 %v1579_v43, 0.0 }
 0xd4c   :  { %v1581_v39 = vpop.f32.mrf.mxu0 }
 0xd4d   :  { %v1596_v44 = vmax.f32 %v1590_v37, 0.0  ;;  %v1582_v31 = vadd.f32 %v1581_v39, %v1516_v38 }
 0xd4f   :  { %v1601_v32 = vpack.c.bf16 %v1596_v44, %v1595_v42  ;;  %v1594_v45 = vmax.f32 %v1582_v31, 0.0 }
 0xd51   :  { %2084 = vmatpush3.bf16.msra.mxu1 %v1601_v32  ;;  %v1600_v47 = vpack.c.bf16 %v1594_v45, %v1593_v46 }
 0xd52   :  { %2085 = vmatprep.subr.bf16.mxu1 %v2125_v7 }
 0xd55   :  { %2086 = vmatpush3.bf16.msra.mxu1 %v1600_v47 }
 0xd58   :  { %2088 = vmatmul.mubr.msk.bf16.vlgmr.msra.gmra.mxu1 %vm325_vm3, %v2123_v48 }
 0xe18   :  { %v1657_v52 = vpop.f32.mrf.mxu1 }
 0xe19   :  { %v1658_v53 = vadd.f32 %v1657_v52, %v1608_v51 }
 0xe1a   :  { %v2089_v40 = vpop.f32.mrf.mxu1 }
 0xe1b   :  { %v1664_v41 = vadd.f32 %v1658_v53, %v2561_v49 }
 0xe1c   :  { %v1660_v55 = vpop.f32.mrf.mxu1 }
 0xe1d   :  { %v1661_v56 = vadd.f32 %v1660_v55, %v1613_v54  ;;  %v1666_v58 = vmul.f32 %v1664_v41, %v1664_v41 }
 0xe1e   :  { %v2090_v57 = vpop.f32.mrf.mxu1 }
 0xe1f   :  { %v1665_v7 = vadd.f32 %v1661_v56, %v2564_v50  ;;  %v1680_v62 = vmul.f32 %v1673_v60, %v1666_v58 }
 0xe21   :  { %v1667_v59 = vmul.f32 %v1665_v7, %v1665_v7 }
 0xe23   :  { %v1681_v63 = vmul.f32 %v1678_v61, %v1667_v59 }
 0xe25   :  { %v1682_v0 = vadd.f32 %v1681_v63, %v1680_v62 }
 0xe27   :  { %v1683_v1 = vrot.slane %v1682_v0, 4 }
 0xe29   :  { %v1684_v2 = vadd.f32 %v1683_v1, %v1682_v0 }
 0xe2b   :  { %v1685_v3 = vrot.slane %v1684_v2, 2 }
 0xe2d   :  { %v1686_v4 = vadd.f32 %v1685_v3, %v1684_v2 }
 0xe2f   :  { %v1687_v5 = vrot.slane %v1686_v4, 1 }
 0xe31   :  { %v1688_v6 = vadd.f32 %v1687_v5, %v1686_v4 }
 0xe33   :  { %1689 = vst [vmem:[%s2609_s8] sm:$0x1] %v1688_v6 }

</bundles_post_ra>
